<compile_context>
chip_gen: v5e
topology: v5e:2x2
jax: 0.10.0
libtpu: 0.0.40
codegen_flags: <defaults>
</compile_context>

<pallas_src>
import jax
import jax.numpy as jnp
from jax import lax
from jax.experimental import pallas as pl
from jax.experimental.pallas import tpu as pltpu


def rnn_kernel(x_ref, valid_ref, dirsel_ref, hwmask_ref,
               gamma_ref, beta_ref, wih_ref, bias_ref, whh_ref, out_ref):
    """Bidirectional masked LSTM with LayerNorm, direction-stacked layout.

    Row layout: time-step blocks of S = 2*Bp rows; within a block,
      rows [0:Bp)   = forward direction, input at time  t = i
      rows [Bp:2Bp) = backward direction, input at time t = T-1-i

    x_ref:      (T*S, I)    stacked, batch-padded input
    valid_ref:  (T*S, 1)    1.0 where that row's timestep is valid
    dirsel_ref: (T*S, 1)    1.0 for forward rows, 0.0 for backward rows
    hwmask_ref: (T*S, 2H)   valid AND direction-lane-half selector (for hw)
    gamma/beta: (1, I)      LayerNorm affine params
    wih_ref:    (I, 8H)     [W_ih_fwd.T | W_ih_bwd.T]   (gate order i,f,g,o)
    bias_ref:   (1, 8H)     [b_fwd | b_bwd], each = bias_ih + bias_hh
    whh_ref:    (2H, 4H)    vstack(W_hh_fwd.T, W_hh_bwd.T)
    out_ref:    (S, T*H)    lane-dense output, lanes [i*H:(i+1)*H] = step i
    """
    H4 = whh_ref.shape[1]
    H = H4 // 4
    S = out_ref.shape[0]
    T = out_ref.shape[1] // H
    TS = x_ref.shape[0]
    eps = 1e-5

    # ---- LayerNorm over the feature axis (is_bn=True branch) ----
    x = x_ref[...]
    mu = jnp.mean(x, axis=-1, keepdims=True)
    var = jnp.mean((x - mu) ** 2, axis=-1, keepdims=True)
    xn = (x - mu) * lax.rsqrt(var + eps) * gamma_ref[...] + beta_ref[...]
    # Dropout: identity (inference / eval-mode semantics).

    # ---- Input projection: ONE MXU matmul for all steps & both directions ----
    gin8 = (jnp.dot(xn, wih_ref[...], preferred_element_type=jnp.float32)
            + bias_ref[...])                                   # (T*S, 8H)
    isfwd = jnp.broadcast_to(dirsel_ref[...], (TS, H4)) > 0.5
    # Route each row to its direction's gate block (bias already folded in).
    gin = jnp.where(isfwd, gin8[:, :H4], gin8[:, H4:])          # (T*S, 4H)

    # ---- Hoisted mask broadcasts (no broadcast_in_dim inside the loop) ----
    validH = jnp.broadcast_to(valid_ref[...], (TS, H)) > 0.0    # (T*S, H) bool
    hwm = hwmask_ref[...] > 0.0                                 # (T*S, 2H) bool
    whh = whh_ref[...]                                          # (2H, 4H)

    # Stacked state: rows [0:Bp) forward, [Bp:S) backward.
    # hw keeps h in the row's direction lane-half, zeros in the other half,
    # so ONE (S,2H)@(2H,4H) dot covers both directions' recurrences.
    hw = jnp.zeros((S, 2 * H), jnp.float32)
    c = jnp.zeros((S, H), jnp.float32)

    outs = []
    # Fully unrolled fused recurrence (T small & static).
    for i in range(T):
        r = i * S
        gates = gin[r:r + S, :] + jnp.dot(hw, whh,
                                          preferred_element_type=jnp.float32)
        # One sigmoid over the full (S,4H) block (lane waste on g is free:
        # what matters is EUP dispatch count on the serial path), one tanh(g),
        # one tanh(c): 3 EUP dispatches per step for BOTH directions.
        sg = jax.nn.sigmoid(gates)
        i_g = sg[:, 0 * H:1 * H]
        f_g = sg[:, 1 * H:2 * H]
        o_g = sg[:, 3 * H:4 * H]
        g_g = jnp.tanh(gates[:, 2 * H:3 * H])
        c_new = f_g * c + i_g * g_g
        h_new = o_g * jnp.tanh(c_new)

        v = validH[r:r + S, :]
        # packed-sequence semantics: padded steps emit 0 and freeze the state
        outs.append(jnp.where(v, h_new, 0.0))
        c = jnp.where(v, c_new, c)
        # Place h_new into the row's direction lane-half; invalid rows and the
        # opposite half keep their old value (opposite half stays 0).
        hw = jnp.where(hwm[r:r + S, :],
                       jnp.concatenate([h_new, h_new], axis=1), hw)

    # Single lane-dense store (S, T*H); wrapper unscrambles with free reshapes.
    out_ref[...] = jnp.concatenate(outs, axis=1)


def init_params(key, input_size, hidden_size):
    """Deterministic synthetic parameters mirroring Rnn.reset_parameters:
    xavier_uniform for weight_ih, orthogonal for weight_hh, zero biases,
    LayerNorm gamma=1 / beta=0."""
    I, H = input_size, hidden_size
    ks = jax.random.split(key, 4)
    xavier = jax.nn.initializers.glorot_uniform()
    ortho = jax.nn.initializers.orthogonal()
    return {
        "w_ih_f": xavier(ks[0], (4 * H, I), jnp.float32),
        "w_hh_f": ortho(ks[1], (4 * H, H), jnp.float32),
        "w_ih_b": xavier(ks[2], (4 * H, I), jnp.float32),
        "w_hh_b": ortho(ks[3], (4 * H, H), jnp.float32),
        "b_f": jnp.zeros((4 * H,), jnp.float32),   # bias_ih + bias_hh (both 0)
        "b_b": jnp.zeros((4 * H,), jnp.float32),
        "gamma": jnp.ones((I,), jnp.float32),
        "beta": jnp.zeros((I,), jnp.float32),
    }


def rnn_forward(vec, mask, params):
    """vec: (T, B, I), mask: (B, T) with contiguous left-aligned 1-prefix per
    row (pack_padded_sequence semantics). Returns (T, B, 2H) float32."""
    T, B, I = vec.shape
    H = params["w_hh_f"].shape[1]
    Bp = ((B + 3) // 4) * 4          # pad so S = 2*Bp is a multiple of 8
    S = 2 * Bp

    x = vec.astype(jnp.float32)
    m = mask.astype(jnp.float32)
    x_pad = jnp.pad(x, ((0, 0), (0, Bp - B), (0, 0)))            # (T, Bp, I)
    m_pad = jnp.pad(m, ((0, Bp - B), (0, 0)))                    # (Bp, T), pad rows invalid

    # Direction-stacked, per-step-aligned input: block i holds
    #   rows [0:Bp)   = x[t = i]       (forward)
    #   rows [Bp:2Bp) = x[t = T-1-i]   (backward)
    x_stk = jnp.concatenate([x_pad, x_pad[::-1]], axis=1).reshape(T * S, I)

    m_f = jnp.transpose(m_pad)                                   # (T, Bp)
    m_b = m_f[::-1]
    valid = jnp.concatenate([m_f, m_b], axis=1).reshape(T * S, 1)

    dirsel = jnp.tile(
        jnp.concatenate([jnp.ones((Bp, 1), jnp.float32),
                         jnp.zeros((Bp, 1), jnp.float32)], axis=0), (T, 1))

    ones_h = jnp.ones((Bp, H), jnp.float32)
    zeros_h = jnp.zeros((Bp, H), jnp.float32)
    dlane = jnp.concatenate(
        [jnp.concatenate([ones_h, zeros_h], axis=1),
         jnp.concatenate([zeros_h, ones_h], axis=1)], axis=0)    # (S, 2H)
    hwmask = jnp.tile(dlane, (T, 1)) * valid                     # (T*S, 2H)

    wih_all = jnp.concatenate([params["w_ih_f"].T,
                               params["w_ih_b"].T], axis=1)      # (I, 8H)
    bias_all = jnp.concatenate([params["b_f"], params["b_b"]]).reshape(1, 8 * H)
    whh_stack = jnp.concatenate([params["w_hh_f"].T,
                                 params["w_hh_b"].T], axis=0)    # (2H, 4H)

    args = (x_stk, valid, dirsel, hwmask,
            params["gamma"].reshape(1, I), params["beta"].reshape(1, I),
            wih_all, bias_all, whh_stack)

    res = pl.pallas_call(
        rnn_kernel,
        out_shape=jax.ShapeDtypeStruct((S, T * H), jnp.float32),
        in_specs=[pl.BlockSpec(memory_space=pltpu.MemorySpace.VMEM)] * len(args),
        out_specs=pl.BlockSpec(memory_space=pltpu.MemorySpace.VMEM),
    )(*args)

    # Cheap layout plumbing outside the serial kernel.
    o = res.reshape(S, T, H)
    o_f = o[:B]                        # (B, T, H) forward, time-ordered
    o_b = o[Bp:Bp + B, ::-1]           # (B, T, H) backward, time un-reversed
    out = jnp.concatenate([o_f, o_b], axis=-1)     # (B, T, 2H)
    return jnp.transpose(out, (1, 0, 2))           # (T, B, 2H)


def rnn_reference(vec, mask, params):
    """Pure-JAX reference (LayerNorm + mask-gated bidirectional LSTM)."""
    T, B, I = vec.shape
    H = params["w_hh_f"].shape[1]
    eps = 1e-5
    x = vec.astype(jnp.float32)
    mu = x.mean(-1, keepdims=True)
    var = ((x - mu) ** 2).mean(-1, keepdims=True)
    xn = (x - mu) * lax.rsqrt(var + eps) * params["gamma"] + params["beta"]
    m = jnp.transpose(mask.astype(jnp.float32))[:, :, None]     # (T, B, 1)

    def run(d):
        w_ih = params[f"w_ih_{d}"]
        w_hh = params[f"w_hh_{d}"]
        b = params[f"b_{d}"]
        h = jnp.zeros((B, H), jnp.float32)
        c = jnp.zeros((B, H), jnp.float32)
        steps = range(T) if d == "f" else range(T - 1, -1, -1)
        out = [None] * T
        for t in steps:
            g = xn[t] @ w_ih.T + h @ w_hh.T + b
            i_g = jax.nn.sigmoid(g[:, :H])
            f_g = jax.nn.sigmoid(g[:, H:2 * H])
            g_g = jnp.tanh(g[:, 2 * H:3 * H])
            o_g = jax.nn.sigmoid(g[:, 3 * H:4 * H])
            c_new = f_g * c + i_g * g_g
            h_new = o_g * jnp.tanh(c_new)
            v = m[t] > 0
            out[t] = jnp.where(v, h_new, 0.0)
            h = jnp.where(v, h_new, h)
            c = jnp.where(v, c_new, c)
        return jnp.stack(out, axis=0)              # (T, B, H)

    return jnp.concatenate([run("f"), run("b")], axis=-1)


if __name__ == "__main__":
    T, B, I, H = 8, 2, 16, 32     # seq_len, batch, input_size, hidden_size

    key = jax.random.PRNGKey(0)
    k_vec, k_par = jax.random.split(key)

    vec = jax.random.normal(k_vec, (T, B, I), jnp.float32)          # (T, B, I)
    lengths = jnp.array([8, 5], jnp.int32)
    mask = (jnp.arange(T)[None, :] < lengths[:, None]).astype(jnp.float32)  # (B, T)

    params = init_params(k_par, I, H)

    out = rnn_forward(vec, mask, params)
    out = jax.block_until_ready(out)
    assert out.shape == (T, B, 2 * H) and out.dtype == jnp.float32

    ref = rnn_reference(vec, mask, params)
    err = float(jnp.max(jnp.abs(out - ref)))
    assert err < 2e-2, f"max abs error vs reference: {err}"

    print("KERNEL_OK")
</pallas_src>

<mosaic_0001>
module attributes {stable_mosaic.version = 11 : i64} {
  func.func @rnn_kernel(%arg0: memref<64x16xf32, #tpu.memory_space<vmem>>, %arg1: memref<64x1xf32, #tpu.memory_space<vmem>>, %arg2: memref<64x1xf32, #tpu.memory_space<vmem>>, %arg3: memref<64x64xf32, #tpu.memory_space<vmem>>, %arg4: memref<1x16xf32, #tpu.memory_space<vmem>>, %arg5: memref<1x16xf32, #tpu.memory_space<vmem>>, %arg6: memref<16x256xf32, #tpu.memory_space<vmem>>, %arg7: memref<1x256xf32, #tpu.memory_space<vmem>>, %arg8: memref<64x128xf32, #tpu.memory_space<vmem>>, %arg9: memref<8x256xf32, #tpu.memory_space<vmem>>) attributes {dimension_semantics = [], scalar_prefetch = 0 : i64, scratch_operands = 0 : i64, tpu.core_type = #tpu.core_type<tc>} {
    %c0 = arith.constant 0 : index
    %c0_0 = arith.constant 0 : index
    %0 = vector.load %arg0[%c0, %c0_0] : memref<64x16xf32, #tpu.memory_space<vmem>>, vector<64x16xf32>
    %cst = arith.constant dense<0.000000e+00> : vector<64xf32>
    %1 = vector.multi_reduction <add>, %0, %cst [1] : vector<64x16xf32> to vector<64xf32>
    %2 = vector.shape_cast %1 : vector<64xf32> to vector<64x1xf32>
    %cst_1 = arith.constant 1.600000e+01 : f32
    %3 = vector.broadcast %cst_1 : f32 to vector<64x1xf32>
    %4 = arith.divf %2, %3 : vector<64x1xf32>
    %5 = vector.broadcast %4 : vector<64x1xf32> to vector<64x16xf32>
    %6 = arith.subf %0, %5 : vector<64x16xf32>
    %7 = arith.mulf %6, %6 : vector<64x16xf32>
    %cst_2 = arith.constant dense<0.000000e+00> : vector<64xf32>
    %8 = vector.multi_reduction <add>, %7, %cst_2 [1] : vector<64x16xf32> to vector<64xf32>
    %9 = vector.shape_cast %8 : vector<64xf32> to vector<64x1xf32>
    %cst_3 = arith.constant 1.600000e+01 : f32
    %10 = vector.broadcast %cst_3 : f32 to vector<64x1xf32>
    %11 = arith.divf %9, %10 : vector<64x1xf32>
    %12 = vector.broadcast %4 : vector<64x1xf32> to vector<64x16xf32>
    %13 = arith.subf %0, %12 : vector<64x16xf32>
    %cst_4 = arith.constant 9.99999974E-6 : f32
    %14 = vector.broadcast %cst_4 : f32 to vector<64x1xf32>
    %15 = arith.addf %11, %14 : vector<64x1xf32>
    %16 = math.rsqrt %15 : vector<64x1xf32>
    %17 = vector.broadcast %16 : vector<64x1xf32> to vector<64x16xf32>
    %18 = arith.mulf %13, %17 : vector<64x16xf32>
    %c0_5 = arith.constant 0 : index
    %c0_6 = arith.constant 0 : index
    %19 = vector.load %arg4[%c0_5, %c0_6] : memref<1x16xf32, #tpu.memory_space<vmem>>, vector<1x16xf32>
    %20 = vector.broadcast %19 : vector<1x16xf32> to vector<64x16xf32>
    %21 = arith.mulf %18, %20 : vector<64x16xf32>
    %c0_7 = arith.constant 0 : index
    %c0_8 = arith.constant 0 : index
    %22 = vector.load %arg5[%c0_7, %c0_8] : memref<1x16xf32, #tpu.memory_space<vmem>>, vector<1x16xf32>
    %23 = vector.broadcast %22 : vector<1x16xf32> to vector<64x16xf32>
    %24 = arith.addf %21, %23 : vector<64x16xf32>
    %c0_9 = arith.constant 0 : index
    %c0_10 = arith.constant 0 : index
    %25 = vector.load %arg6[%c0_9, %c0_10] : memref<16x256xf32, #tpu.memory_space<vmem>>, vector<16x256xf32>
    %cst_11 = arith.constant dense<0.000000e+00> : vector<64x256xf32>
    %26 = tpu.matmul %24, %25, %cst_11 {dimension_numbers = #tpu.dot_dimension_numbers<[1], [0], [0], [1], [0, 0, 1, 1], [], []>} : vector<64x16xf32>, vector<16x256xf32>, vector<64x256xf32> -> vector<64x256xf32>
    %c0_12 = arith.constant 0 : index
    %c0_13 = arith.constant 0 : index
    %27 = vector.load %arg7[%c0_12, %c0_13] : memref<1x256xf32, #tpu.memory_space<vmem>>, vector<1x256xf32>
    %28 = vector.broadcast %27 : vector<1x256xf32> to vector<64x256xf32>
    %29 = arith.addf %26, %28 : vector<64x256xf32>
    %c0_14 = arith.constant 0 : index
    %c0_15 = arith.constant 0 : index
    %30 = vector.load %arg2[%c0_14, %c0_15] : memref<64x1xf32, #tpu.memory_space<vmem>>, vector<64x1xf32>
    %31 = vector.shape_cast %30 : vector<64x1xf32> to vector<64x1xf32>
    %32 = vector.broadcast %31 : vector<64x1xf32> to vector<64x128xf32>
    %cst_16 = arith.constant 5.000000e-01 : f32
    %33 = vector.broadcast %cst_16 : f32 to vector<64x128xf32>
    %34 = arith.cmpf ogt, %32, %33 : vector<64x128xf32>
    %35 = vector.extract_strided_slice %29 {offsets = [0, 0], sizes = [64, 128], strides = [1, 1]} : vector<64x256xf32> to vector<64x128xf32>
    %36 = vector.extract_strided_slice %29 {offsets = [0, 128], sizes = [64, 128], strides = [1, 1]} : vector<64x256xf32> to vector<64x128xf32>
    %37 = arith.select %34, %35, %36 : vector<64x128xi1>, vector<64x128xf32>
    %c0_17 = arith.constant 0 : index
    %c0_18 = arith.constant 0 : index
    %38 = vector.load %arg1[%c0_17, %c0_18] : memref<64x1xf32, #tpu.memory_space<vmem>>, vector<64x1xf32>
    %39 = vector.shape_cast %38 : vector<64x1xf32> to vector<64x1xf32>
    %40 = vector.broadcast %39 : vector<64x1xf32> to vector<64x32xf32>
    %cst_19 = arith.constant 0.000000e+00 : f32
    %41 = vector.broadcast %cst_19 : f32 to vector<64x32xf32>
    %42 = arith.cmpf ogt, %40, %41 : vector<64x32xf32>
    %c0_20 = arith.constant 0 : index
    %c0_21 = arith.constant 0 : index
    %43 = vector.load %arg3[%c0_20, %c0_21] : memref<64x64xf32, #tpu.memory_space<vmem>>, vector<64x64xf32>
    %cst_22 = arith.constant 0.000000e+00 : f32
    %44 = vector.broadcast %cst_22 : f32 to vector<64x64xf32>
    %45 = arith.cmpf ogt, %43, %44 : vector<64x64xf32>
    %c0_23 = arith.constant 0 : index
    %c0_24 = arith.constant 0 : index
    %46 = vector.load %arg8[%c0_23, %c0_24] : memref<64x128xf32, #tpu.memory_space<vmem>>, vector<64x128xf32>
    %cst_25 = arith.constant 0.000000e+00 : f32
    %47 = vector.broadcast %cst_25 : f32 to vector<8x64xf32>
    %cst_26 = arith.constant 0.000000e+00 : f32
    %48 = vector.broadcast %cst_26 : f32 to vector<8x32xf32>
    %49 = vector.extract_strided_slice %37 {offsets = [0, 0], sizes = [8, 128], strides = [1, 1]} : vector<64x128xf32> to vector<8x128xf32>
    %cst_27 = arith.constant dense<0.000000e+00> : vector<8x128xf32>
    %50 = tpu.matmul %47, %46, %cst_27 {dimension_numbers = #tpu.dot_dimension_numbers<[1], [0], [0], [1], [0, 0, 1, 1], [], []>} : vector<8x64xf32>, vector<64x128xf32>, vector<8x128xf32> -> vector<8x128xf32>
    %51 = arith.addf %49, %50 : vector<8x128xf32>
    %52 = arith.negf %51 : vector<8x128xf32>
    %53 = math.exp %52 : vector<8x128xf32>
    %cst_28 = arith.constant 1.000000e+00 : f32
    %54 = vector.broadcast %cst_28 : f32 to vector<8x128xf32>
    %55 = arith.addf %54, %53 : vector<8x128xf32>
    %56 = arith.divf %54, %55 : vector<8x128xf32>
    %57 = vector.extract_strided_slice %56 {offsets = [0, 0], sizes = [8, 32], strides = [1, 1]} : vector<8x128xf32> to vector<8x32xf32>
    %58 = vector.extract_strided_slice %56 {offsets = [0, 32], sizes = [8, 32], strides = [1, 1]} : vector<8x128xf32> to vector<8x32xf32>
    %59 = vector.extract_strided_slice %56 {offsets = [0, 96], sizes = [8, 32], strides = [1, 1]} : vector<8x128xf32> to vector<8x32xf32>
    %60 = vector.extract_strided_slice %51 {offsets = [0, 64], sizes = [8, 32], strides = [1, 1]} : vector<8x128xf32> to vector<8x32xf32>
    %61 = math.tanh %60 : vector<8x32xf32>
    %62 = arith.mulf %58, %48 : vector<8x32xf32>
    %63 = arith.mulf %57, %61 : vector<8x32xf32>
    %64 = arith.addf %62, %63 : vector<8x32xf32>
    %65 = math.tanh %64 : vector<8x32xf32>
    %66 = arith.mulf %59, %65 : vector<8x32xf32>
    %67 = vector.extract_strided_slice %42 {offsets = [0, 0], sizes = [8, 32], strides = [1, 1]} : vector<64x32xi1> to vector<8x32xi1>
    %cst_29 = arith.constant 0.000000e+00 : f32
    %68 = vector.broadcast %cst_29 : f32 to vector<8x32xf32>
    %69 = arith.select %67, %66, %68 : vector<8x32xi1>, vector<8x32xf32>
    %70 = arith.select %67, %64, %48 : vector<8x32xi1>, vector<8x32xf32>
    %71 = vector.extract_strided_slice %45 {offsets = [0, 0], sizes = [8, 64], strides = [1, 1]} : vector<64x64xi1> to vector<8x64xi1>
    %72 = tpu.concatenate %66, %66 in 1 : vector<8x32xf32>, vector<8x32xf32> -> vector<8x64xf32>
    %73 = arith.select %71, %72, %47 : vector<8x64xi1>, vector<8x64xf32>
    %74 = vector.extract_strided_slice %37 {offsets = [8, 0], sizes = [8, 128], strides = [1, 1]} : vector<64x128xf32> to vector<8x128xf32>
    %cst_30 = arith.constant dense<0.000000e+00> : vector<8x128xf32>
    %75 = tpu.matmul %73, %46, %cst_30 {dimension_numbers = #tpu.dot_dimension_numbers<[1], [0], [0], [1], [0, 0, 1, 1], [], []>} : vector<8x64xf32>, vector<64x128xf32>, vector<8x128xf32> -> vector<8x128xf32>
    %76 = arith.addf %74, %75 : vector<8x128xf32>
    %77 = arith.negf %76 : vector<8x128xf32>
    %78 = math.exp %77 : vector<8x128xf32>
    %cst_31 = arith.constant 1.000000e+00 : f32
    %79 = vector.broadcast %cst_31 : f32 to vector<8x128xf32>
    %80 = arith.addf %79, %78 : vector<8x128xf32>
    %81 = arith.divf %79, %80 : vector<8x128xf32>
    %82 = vector.extract_strided_slice %81 {offsets = [0, 0], sizes = [8, 32], strides = [1, 1]} : vector<8x128xf32> to vector<8x32xf32>
    %83 = vector.extract_strided_slice %81 {offsets = [0, 32], sizes = [8, 32], strides = [1, 1]} : vector<8x128xf32> to vector<8x32xf32>
    %84 = vector.extract_strided_slice %81 {offsets = [0, 96], sizes = [8, 32], strides = [1, 1]} : vector<8x128xf32> to vector<8x32xf32>
    %85 = vector.extract_strided_slice %76 {offsets = [0, 64], sizes = [8, 32], strides = [1, 1]} : vector<8x128xf32> to vector<8x32xf32>
    %86 = math.tanh %85 : vector<8x32xf32>
    %87 = arith.mulf %83, %70 : vector<8x32xf32>
    %88 = arith.mulf %82, %86 : vector<8x32xf32>
    %89 = arith.addf %87, %88 : vector<8x32xf32>
    %90 = math.tanh %89 : vector<8x32xf32>
    %91 = arith.mulf %84, %90 : vector<8x32xf32>
    %92 = vector.extract_strided_slice %42 {offsets = [8, 0], sizes = [8, 32], strides = [1, 1]} : vector<64x32xi1> to vector<8x32xi1>
    %cst_32 = arith.constant 0.000000e+00 : f32
    %93 = vector.broadcast %cst_32 : f32 to vector<8x32xf32>
    %94 = arith.select %92, %91, %93 : vector<8x32xi1>, vector<8x32xf32>
    %95 = arith.select %92, %89, %70 : vector<8x32xi1>, vector<8x32xf32>
    %96 = vector.extract_strided_slice %45 {offsets = [8, 0], sizes = [8, 64], strides = [1, 1]} : vector<64x64xi1> to vector<8x64xi1>
    %97 = tpu.concatenate %91, %91 in 1 : vector<8x32xf32>, vector<8x32xf32> -> vector<8x64xf32>
    %98 = arith.select %96, %97, %73 : vector<8x64xi1>, vector<8x64xf32>
    %99 = vector.extract_strided_slice %37 {offsets = [16, 0], sizes = [8, 128], strides = [1, 1]} : vector<64x128xf32> to vector<8x128xf32>
    %cst_33 = arith.constant dense<0.000000e+00> : vector<8x128xf32>
    %100 = tpu.matmul %98, %46, %cst_33 {dimension_numbers = #tpu.dot_dimension_numbers<[1], [0], [0], [1], [0, 0, 1, 1], [], []>} : vector<8x64xf32>, vector<64x128xf32>, vector<8x128xf32> -> vector<8x128xf32>
    %101 = arith.addf %99, %100 : vector<8x128xf32>
    %102 = arith.negf %101 : vector<8x128xf32>
    %103 = math.exp %102 : vector<8x128xf32>
    %cst_34 = arith.constant 1.000000e+00 : f32
    %104 = vector.broadcast %cst_34 : f32 to vector<8x128xf32>
    %105 = arith.addf %104, %103 : vector<8x128xf32>
    %106 = arith.divf %104, %105 : vector<8x128xf32>
    %107 = vector.extract_strided_slice %106 {offsets = [0, 0], sizes = [8, 32], strides = [1, 1]} : vector<8x128xf32> to vector<8x32xf32>
    %108 = vector.extract_strided_slice %106 {offsets = [0, 32], sizes = [8, 32], strides = [1, 1]} : vector<8x128xf32> to vector<8x32xf32>
    %109 = vector.extract_strided_slice %106 {offsets = [0, 96], sizes = [8, 32], strides = [1, 1]} : vector<8x128xf32> to vector<8x32xf32>
    %110 = vector.extract_strided_slice %101 {offsets = [0, 64], sizes = [8, 32], strides = [1, 1]} : vector<8x128xf32> to vector<8x32xf32>
    %111 = math.tanh %110 : vector<8x32xf32>
    %112 = arith.mulf %108, %95 : vector<8x32xf32>
    %113 = arith.mulf %107, %111 : vector<8x32xf32>
    %114 = arith.addf %112, %113 : vector<8x32xf32>
    %115 = math.tanh %114 : vector<8x32xf32>
    %116 = arith.mulf %109, %115 : vector<8x32xf32>
    %117 = vector.extract_strided_slice %42 {offsets = [16, 0], sizes = [8, 32], strides = [1, 1]} : vector<64x32xi1> to vector<8x32xi1>
    %cst_35 = arith.constant 0.000000e+00 : f32
    %118 = vector.broadcast %cst_35 : f32 to vector<8x32xf32>
    %119 = arith.select %117, %116, %118 : vector<8x32xi1>, vector<8x32xf32>
    %120 = arith.select %117, %114, %95 : vector<8x32xi1>, vector<8x32xf32>
    %121 = vector.extract_strided_slice %45 {offsets = [16, 0], sizes = [8, 64], strides = [1, 1]} : vector<64x64xi1> to vector<8x64xi1>
    %122 = tpu.concatenate %116, %116 in 1 : vector<8x32xf32>, vector<8x32xf32> -> vector<8x64xf32>
    %123 = arith.select %121, %122, %98 : vector<8x64xi1>, vector<8x64xf32>
    %124 = vector.extract_strided_slice %37 {offsets = [24, 0], sizes = [8, 128], strides = [1, 1]} : vector<64x128xf32> to vector<8x128xf32>
    %cst_36 = arith.constant dense<0.000000e+00> : vector<8x128xf32>
    %125 = tpu.matmul %123, %46, %cst_36 {dimension_numbers = #tpu.dot_dimension_numbers<[1], [0], [0], [1], [0, 0, 1, 1], [], []>} : vector<8x64xf32>, vector<64x128xf32>, vector<8x128xf32> -> vector<8x128xf32>
    %126 = arith.addf %124, %125 : vector<8x128xf32>
    %127 = arith.negf %126 : vector<8x128xf32>
    %128 = math.exp %127 : vector<8x128xf32>
    %cst_37 = arith.constant 1.000000e+00 : f32
    %129 = vector.broadcast %cst_37 : f32 to vector<8x128xf32>
    %130 = arith.addf %129, %128 : vector<8x128xf32>
    %131 = arith.divf %129, %130 : vector<8x128xf32>
    %132 = vector.extract_strided_slice %131 {offsets = [0, 0], sizes = [8, 32], strides = [1, 1]} : vector<8x128xf32> to vector<8x32xf32>
    %133 = vector.extract_strided_slice %131 {offsets = [0, 32], sizes = [8, 32], strides = [1, 1]} : vector<8x128xf32> to vector<8x32xf32>
    %134 = vector.extract_strided_slice %131 {offsets = [0, 96], sizes = [8, 32], strides = [1, 1]} : vector<8x128xf32> to vector<8x32xf32>
    %135 = vector.extract_strided_slice %126 {offsets = [0, 64], sizes = [8, 32], strides = [1, 1]} : vector<8x128xf32> to vector<8x32xf32>
    %136 = math.tanh %135 : vector<8x32xf32>
    %137 = arith.mulf %133, %120 : vector<8x32xf32>
    %138 = arith.mulf %132, %136 : vector<8x32xf32>
    %139 = arith.addf %137, %138 : vector<8x32xf32>
    %140 = math.tanh %139 : vector<8x32xf32>
    %141 = arith.mulf %134, %140 : vector<8x32xf32>
    %142 = vector.extract_strided_slice %42 {offsets = [24, 0], sizes = [8, 32], strides = [1, 1]} : vector<64x32xi1> to vector<8x32xi1>
    %cst_38 = arith.constant 0.000000e+00 : f32
    %143 = vector.broadcast %cst_38 : f32 to vector<8x32xf32>
    %144 = arith.select %142, %141, %143 : vector<8x32xi1>, vector<8x32xf32>
    %145 = arith.select %142, %139, %120 : vector<8x32xi1>, vector<8x32xf32>
    %146 = vector.extract_strided_slice %45 {offsets = [24, 0], sizes = [8, 64], strides = [1, 1]} : vector<64x64xi1> to vector<8x64xi1>
    %147 = tpu.concatenate %141, %141 in 1 : vector<8x32xf32>, vector<8x32xf32> -> vector<8x64xf32>
    %148 = arith.select %146, %147, %123 : vector<8x64xi1>, vector<8x64xf32>
    %149 = vector.extract_strided_slice %37 {offsets = [32, 0], sizes = [8, 128], strides = [1, 1]} : vector<64x128xf32> to vector<8x128xf32>
    %cst_39 = arith.constant dense<0.000000e+00> : vector<8x128xf32>
    %150 = tpu.matmul %148, %46, %cst_39 {dimension_numbers = #tpu.dot_dimension_numbers<[1], [0], [0], [1], [0, 0, 1, 1], [], []>} : vector<8x64xf32>, vector<64x128xf32>, vector<8x128xf32> -> vector<8x128xf32>
    %151 = arith.addf %149, %150 : vector<8x128xf32>
    %152 = arith.negf %151 : vector<8x128xf32>
    %153 = math.exp %152 : vector<8x128xf32>
    %cst_40 = arith.constant 1.000000e+00 : f32
    %154 = vector.broadcast %cst_40 : f32 to vector<8x128xf32>
    %155 = arith.addf %154, %153 : vector<8x128xf32>
    %156 = arith.divf %154, %155 : vector<8x128xf32>
    %157 = vector.extract_strided_slice %156 {offsets = [0, 0], sizes = [8, 32], strides = [1, 1]} : vector<8x128xf32> to vector<8x32xf32>
    %158 = vector.extract_strided_slice %156 {offsets = [0, 32], sizes = [8, 32], strides = [1, 1]} : vector<8x128xf32> to vector<8x32xf32>
    %159 = vector.extract_strided_slice %156 {offsets = [0, 96], sizes = [8, 32], strides = [1, 1]} : vector<8x128xf32> to vector<8x32xf32>
    %160 = vector.extract_strided_slice %151 {offsets = [0, 64], sizes = [8, 32], strides = [1, 1]} : vector<8x128xf32> to vector<8x32xf32>
    %161 = math.tanh %160 : vector<8x32xf32>
    %162 = arith.mulf %158, %145 : vector<8x32xf32>
    %163 = arith.mulf %157, %161 : vector<8x32xf32>
    %164 = arith.addf %162, %163 : vector<8x32xf32>
    %165 = math.tanh %164 : vector<8x32xf32>
    %166 = arith.mulf %159, %165 : vector<8x32xf32>
    %167 = vector.extract_strided_slice %42 {offsets = [32, 0], sizes = [8, 32], strides = [1, 1]} : vector<64x32xi1> to vector<8x32xi1>
    %cst_41 = arith.constant 0.000000e+00 : f32
    %168 = vector.broadcast %cst_41 : f32 to vector<8x32xf32>
    %169 = arith.select %167, %166, %168 : vector<8x32xi1>, vector<8x32xf32>
    %170 = arith.select %167, %164, %145 : vector<8x32xi1>, vector<8x32xf32>
    %171 = vector.extract_strided_slice %45 {offsets = [32, 0], sizes = [8, 64], strides = [1, 1]} : vector<64x64xi1> to vector<8x64xi1>
    %172 = tpu.concatenate %166, %166 in 1 : vector<8x32xf32>, vector<8x32xf32> -> vector<8x64xf32>
    %173 = arith.select %171, %172, %148 : vector<8x64xi1>, vector<8x64xf32>
    %174 = vector.extract_strided_slice %37 {offsets = [40, 0], sizes = [8, 128], strides = [1, 1]} : vector<64x128xf32> to vector<8x128xf32>
    %cst_42 = arith.constant dense<0.000000e+00> : vector<8x128xf32>
    %175 = tpu.matmul %173, %46, %cst_42 {dimension_numbers = #tpu.dot_dimension_numbers<[1], [0], [0], [1], [0, 0, 1, 1], [], []>} : vector<8x64xf32>, vector<64x128xf32>, vector<8x128xf32> -> vector<8x128xf32>
    %176 = arith.addf %174, %175 : vector<8x128xf32>
    %177 = arith.negf %176 : vector<8x128xf32>
    %178 = math.exp %177 : vector<8x128xf32>
    %cst_43 = arith.constant 1.000000e+00 : f32
    %179 = vector.broadcast %cst_43 : f32 to vector<8x128xf32>
    %180 = arith.addf %179, %178 : vector<8x128xf32>
    %181 = arith.divf %179, %180 : vector<8x128xf32>
    %182 = vector.extract_strided_slice %181 {offsets = [0, 0], sizes = [8, 32], strides = [1, 1]} : vector<8x128xf32> to vector<8x32xf32>
    %183 = vector.extract_strided_slice %181 {offsets = [0, 32], sizes = [8, 32], strides = [1, 1]} : vector<8x128xf32> to vector<8x32xf32>
    %184 = vector.extract_strided_slice %181 {offsets = [0, 96], sizes = [8, 32], strides = [1, 1]} : vector<8x128xf32> to vector<8x32xf32>
    %185 = vector.extract_strided_slice %176 {offsets = [0, 64], sizes = [8, 32], strides = [1, 1]} : vector<8x128xf32> to vector<8x32xf32>
    %186 = math.tanh %185 : vector<8x32xf32>
    %187 = arith.mulf %183, %170 : vector<8x32xf32>
    %188 = arith.mulf %182, %186 : vector<8x32xf32>
    %189 = arith.addf %187, %188 : vector<8x32xf32>
    %190 = math.tanh %189 : vector<8x32xf32>
    %191 = arith.mulf %184, %190 : vector<8x32xf32>
    %192 = vector.extract_strided_slice %42 {offsets = [40, 0], sizes = [8, 32], strides = [1, 1]} : vector<64x32xi1> to vector<8x32xi1>
    %cst_44 = arith.constant 0.000000e+00 : f32
    %193 = vector.broadcast %cst_44 : f32 to vector<8x32xf32>
    %194 = arith.select %192, %191, %193 : vector<8x32xi1>, vector<8x32xf32>
    %195 = arith.select %192, %189, %170 : vector<8x32xi1>, vector<8x32xf32>
    %196 = vector.extract_strided_slice %45 {offsets = [40, 0], sizes = [8, 64], strides = [1, 1]} : vector<64x64xi1> to vector<8x64xi1>
    %197 = tpu.concatenate %191, %191 in 1 : vector<8x32xf32>, vector<8x32xf32> -> vector<8x64xf32>
    %198 = arith.select %196, %197, %173 : vector<8x64xi1>, vector<8x64xf32>
    %199 = vector.extract_strided_slice %37 {offsets = [48, 0], sizes = [8, 128], strides = [1, 1]} : vector<64x128xf32> to vector<8x128xf32>
    %cst_45 = arith.constant dense<0.000000e+00> : vector<8x128xf32>
    %200 = tpu.matmul %198, %46, %cst_45 {dimension_numbers = #tpu.dot_dimension_numbers<[1], [0], [0], [1], [0, 0, 1, 1], [], []>} : vector<8x64xf32>, vector<64x128xf32>, vector<8x128xf32> -> vector<8x128xf32>
    %201 = arith.addf %199, %200 : vector<8x128xf32>
    %202 = arith.negf %201 : vector<8x128xf32>
    %203 = math.exp %202 : vector<8x128xf32>
    %cst_46 = arith.constant 1.000000e+00 : f32
    %204 = vector.broadcast %cst_46 : f32 to vector<8x128xf32>
    %205 = arith.addf %204, %203 : vector<8x128xf32>
    %206 = arith.divf %204, %205 : vector<8x128xf32>
    %207 = vector.extract_strided_slice %206 {offsets = [0, 0], sizes = [8, 32], strides = [1, 1]} : vector<8x128xf32> to vector<8x32xf32>
    %208 = vector.extract_strided_slice %206 {offsets = [0, 32], sizes = [8, 32], strides = [1, 1]} : vector<8x128xf32> to vector<8x32xf32>
    %209 = vector.extract_strided_slice %206 {offsets = [0, 96], sizes = [8, 32], strides = [1, 1]} : vector<8x128xf32> to vector<8x32xf32>
    %210 = vector.extract_strided_slice %201 {offsets = [0, 64], sizes = [8, 32], strides = [1, 1]} : vector<8x128xf32> to vector<8x32xf32>
    %211 = math.tanh %210 : vector<8x32xf32>
    %212 = arith.mulf %208, %195 : vector<8x32xf32>
    %213 = arith.mulf %207, %211 : vector<8x32xf32>
    %214 = arith.addf %212, %213 : vector<8x32xf32>
    %215 = math.tanh %214 : vector<8x32xf32>
    %216 = arith.mulf %209, %215 : vector<8x32xf32>
    %217 = vector.extract_strided_slice %42 {offsets = [48, 0], sizes = [8, 32], strides = [1, 1]} : vector<64x32xi1> to vector<8x32xi1>
    %cst_47 = arith.constant 0.000000e+00 : f32
    %218 = vector.broadcast %cst_47 : f32 to vector<8x32xf32>
    %219 = arith.select %217, %216, %218 : vector<8x32xi1>, vector<8x32xf32>
    %220 = arith.select %217, %214, %195 : vector<8x32xi1>, vector<8x32xf32>
    %221 = vector.extract_strided_slice %45 {offsets = [48, 0], sizes = [8, 64], strides = [1, 1]} : vector<64x64xi1> to vector<8x64xi1>
    %222 = tpu.concatenate %216, %216 in 1 : vector<8x32xf32>, vector<8x32xf32> -> vector<8x64xf32>
    %223 = arith.select %221, %222, %198 : vector<8x64xi1>, vector<8x64xf32>
    %224 = vector.extract_strided_slice %37 {offsets = [56, 0], sizes = [8, 128], strides = [1, 1]} : vector<64x128xf32> to vector<8x128xf32>
    %cst_48 = arith.constant dense<0.000000e+00> : vector<8x128xf32>
    %225 = tpu.matmul %223, %46, %cst_48 {dimension_numbers = #tpu.dot_dimension_numbers<[1], [0], [0], [1], [0, 0, 1, 1], [], []>} : vector<8x64xf32>, vector<64x128xf32>, vector<8x128xf32> -> vector<8x128xf32>
    %226 = arith.addf %224, %225 : vector<8x128xf32>
    %227 = arith.negf %226 : vector<8x128xf32>
    %228 = math.exp %227 : vector<8x128xf32>
    %cst_49 = arith.constant 1.000000e+00 : f32
    %229 = vector.broadcast %cst_49 : f32 to vector<8x128xf32>
    %230 = arith.addf %229, %228 : vector<8x128xf32>
    %231 = arith.divf %229, %230 : vector<8x128xf32>
    %232 = vector.extract_strided_slice %231 {offsets = [0, 0], sizes = [8, 32], strides = [1, 1]} : vector<8x128xf32> to vector<8x32xf32>
    %233 = vector.extract_strided_slice %231 {offsets = [0, 32], sizes = [8, 32], strides = [1, 1]} : vector<8x128xf32> to vector<8x32xf32>
    %234 = vector.extract_strided_slice %231 {offsets = [0, 96], sizes = [8, 32], strides = [1, 1]} : vector<8x128xf32> to vector<8x32xf32>
    %235 = vector.extract_strided_slice %226 {offsets = [0, 64], sizes = [8, 32], strides = [1, 1]} : vector<8x128xf32> to vector<8x32xf32>
    %236 = math.tanh %235 : vector<8x32xf32>
    %237 = arith.mulf %233, %220 : vector<8x32xf32>
    %238 = arith.mulf %232, %236 : vector<8x32xf32>
    %239 = arith.addf %237, %238 : vector<8x32xf32>
    %240 = math.tanh %239 : vector<8x32xf32>
    %241 = arith.mulf %234, %240 : vector<8x32xf32>
    %242 = vector.extract_strided_slice %42 {offsets = [56, 0], sizes = [8, 32], strides = [1, 1]} : vector<64x32xi1> to vector<8x32xi1>
    %cst_50 = arith.constant 0.000000e+00 : f32
    %243 = vector.broadcast %cst_50 : f32 to vector<8x32xf32>
    %244 = arith.select %242, %241, %243 : vector<8x32xi1>, vector<8x32xf32>
    %245 = tpu.concatenate %69, %94, %119, %144, %169, %194, %219, %244 in 1 : vector<8x32xf32>, vector<8x32xf32>, vector<8x32xf32>, vector<8x32xf32>, vector<8x32xf32>, vector<8x32xf32>, vector<8x32xf32>, vector<8x32xf32> -> vector<8x256xf32>
    %c0_51 = arith.constant 0 : index
    %c0_52 = arith.constant 0 : index
    %246 = vector.load %arg9[%c0_51, %c0_52] : memref<8x256xf32, #tpu.memory_space<vmem>>, vector<8x256xf32>
    tpu.vector_store %arg9[%c0_51, %c0_52], %245 {strides = array<i32>} : memref<8x256xf32, #tpu.memory_space<vmem>>, vector<8x256xf32>,
    return
  }
}

</mosaic_0001>

<bundles_post_ra>
// kernel: tpu_custom_call.1
= control target key start
LH: loop header
LB: loop body
LE: loop exit
PB: predicated region body
PF: predicated region fallthrough
CT: control target
= control target key end

     0   :  { %vm41_vm0 = vcmask 130048   ;;  %s1877_s0 = inlined_call_operand.vmem [shape: f32[64,16], index: 0, kind: input, shape index: {}]   ;;  %s1878_s1 = inlined_call_operand.vmem [shape: f32[64,1], index: 1, kind: input, shape index: {}]   ;;  %s1879_s2 = inlined_call_operand.vmem [shape: f32[64,1], index: 2, kind: input, shape index: {}]   ;;  %s1880_s3 = inlined_call_operand.vmem [shape: f32[64,64], index: 3, kind: input, shape index: {}]   ;;  %s1881_s4 = inlined_call_operand.vmem [shape: f32[1,16], index: 4, kind: input, shape index: {}]   ;;  %s1882_s5 = inlined_call_operand.vmem [shape: f32[1,16], index: 5, kind: input, shape index: {}]   ;;  %s1883_s6 = inlined_call_operand.vmem [shape: f32[16,256], index: 6, kind: input, shape index: {}]   ;;  %s1884_s7 = inlined_call_operand.vmem [shape: f32[1,256], index: 7, kind: input, shape index: {}]   ;;  %s1885_s8 = inlined_call_operand.vmem [shape: f32[64,128], index: 8, kind: input, shape index: {}]   ;;  %s1886_s9 = inlined_call_operand.hbm [shape: f32[8,256], index: 9, kind: output, shape index: {}]  }
   0x1   :  { %v33_v0 = vld [vmem:[%s1877_s0] sm:$0xff] }
   0x2   :  { %v42_v1 = vsel %vm41_vm0, %v33_v0, 0.0 }
   0x3   :  { %14 = vsyncpa [#allocation3], 0  ;;  %43 = vadd.xlane.f32.xlu0 %v42_v1  ;;  %v1277_v2 = vmov 16.0   ;;  %v1349_v14 = vld [vmem:[%s1885_s8 + $0x38] sm:$0xff]  ;;  %v1356_v15 = vld [vmem:[%s1885_s8 + $0x30] sm:$0xff]  ;;  %v1278_v26 = vmov 0.0  }
   0x4   :  { %1167 = vrcp.f32 %v1277_v2  ;;  %519 = vmatpush.msra.mxu2 %v1349_v14  ;;  %592 = vmatpush.msra.mxu3 %v1349_v14  ;;  %v1363_v16 = vld [vmem:[%s1885_s8 + $0x28] sm:$0xff]  ;;  %v1370_v17 = vld [vmem:[%s1885_s8 + $0x20] sm:$0xff]  ;;  %v1377_v18 = vld [vmem:[%s1885_s8 + $0x18] sm:$0xff]  ;;  %v1279_v28 = vmov 0   ;;  %s1280_s20 = smov 64   ;;  %vm578_vm13 = vcmask 261120  }
   0x5   :  { %v1384_v19 = vld [vmem:[%s1885_s8 + $0x10] sm:$0xff]  ;;  %v1391_v20 = vld [vmem:[%s1885_s8 + $0x8] sm:$0xff]  ;;  %v1396_v21 = vld [vmem:[%s1885_s8] sm:$0xff]  ;;  %1162 = vset.pattern.permute.xlu1 %v1279_v28  ;;  %1163 = vset.pattern.permute.xlu2 %v1279_v28  ;;  %vm507_vm15 = vcmask 523264   ;;  %s1282_s24 = smov 96  }
   0x6   :  { %520 = vmatpush.msra.mxu2 %v1356_v15  ;;  %593 = vmatpush.msra.mxu3 %v1356_v15  ;;  %v251_v22 = vld [vmem:[%s1883_s6 + $0x10] sm:$0xff]  ;;  %v252_v23 = vld [vmem:[%s1883_s6 + $0x18] sm:$0xff]  ;;  %v249_v24 = vld [vmem:[%s1883_s6] sm:$0xff] }
   0x7   :  { %297 = vmatpush.msra.mxu0 %v251_v22  ;;  %v250_v25 = vld [vmem:[%s1883_s6 + $0x8] sm:$0xff]  ;;  %338 = vmatpush.msra.mxu1 %v252_v23  ;;  %v365_v27 = vld [vmem:[%s1879_s2] sm:$0xff]  ;;  %s1115_s6 = sshll.u32 %s1886_s9, 4  ;;  %s1116_s6 = int_to_ptr.hbm [resolvable:$true] %s1115_s6 }
   0x8   :  { %521 = vmatpush.msra.mxu2 %v1363_v16  ;;  %594 = vmatpush.msra.mxu3 %v1363_v16  ;;  %v1442_v38 = vld [vmem:[%s1881_s4] ss:$0 sm:$0xff] }
   0x9   :  { %298 = vmatpush.msra.mxu0 %v249_v24  ;;  %339 = vmatpush.msra.mxu1 %v250_v25  ;;  %v1449_v41 = vld [vmem:[%s1882_s5] ss:$0 sm:$0xff] }
   0xa   :  { %v1168_v3 = vpop.eup %1167  ;;  %522 = vmatpush.msra.mxu2 %v1370_v17  ;;  %595 = vmatpush.msra.mxu3 %v1370_v17  ;;  %v253_v44 = vld [vmem:[%s1884_s7] sm:$0x3]  ;;  %s1281_s7 = smov 32  }
   0xb   :  { %v67_v4 = vmul.f32 16.0, %v1168_v3  ;;  %vm71_vm1 = vweird.f32 %v1168_v3  ;;  %375 = vperm.xlu1 %1162, %v365_v27   ;;  %1164 = vset.pattern.permute.xlu0 %v1279_v28  ;;  %v1460_v45 = vperm.slane %v253_v44, 0  ;;  %v1462_v46 = vperm.slane %v253_v44, 1  ;;  %v429_v27 = vld [vmem:[%s1878_s1] sm:$0xff] }
   0xc   :  { %523 = vmatpush.msra.mxu2 %v1377_v18  ;;  %596 = vmatpush.msra.mxu3 %v1377_v18 }
   0xd   :  { %v68_v5 = vsub.f32 1.0, %v67_v4 }
   0xe   :  { %524 = vmatpush.msra.mxu2 %v1384_v19  ;;  %597 = vmatpush.msra.mxu3 %v1384_v19 }
   0xf   :  { %v69_v6 = vmul.f32 %v1168_v3, %v68_v5 }
  0x10   :  { %525 = vmatpush.msra.mxu2 %v1391_v20  ;;  %598 = vmatpush.msra.mxu3 %v1391_v20 }
  0x11   :  { %v70_v7 = vadd.f32 %v1168_v3, %v69_v6 }
  0x12   :  { %526 = vmatpush.msra.mxu2 %v1396_v21  ;;  %599 = vmatpush.msra.mxu3 %v1396_v21 }
  0x13   :  { %v1338_v8 = vsel %vm71_vm1, %v1168_v3, %v70_v7  ;;  %527 = vmatmul.f32.vlgmr.msra.gmra.mxu2 %v1278_v26  ;;  %v34_v7 = vld [vmem:[%s1877_s0 + $0x8] sm:$0xff] }
  0x14   :  { %664 = vmatpush.msrb.mxu2 %v1349_v14  ;;  %736 = vmatpush.msrb.mxu3 %v1349_v14 }
  0x16   :  { %665 = vmatpush.msrb.mxu2 %v1356_v15  ;;  %737 = vmatpush.msrb.mxu3 %v1356_v15 }
  0x18   :  { %666 = vmatpush.msrb.mxu2 %v1363_v16  ;;  %738 = vmatpush.msrb.mxu3 %v1363_v16 }
  0x1a   :  { %667 = vmatpush.msrb.mxu2 %v1370_v17  ;;  %739 = vmatpush.msrb.mxu3 %v1370_v17 }
  0x1c   :  { %668 = vmatpush.msrb.mxu2 %v1377_v18  ;;  %740 = vmatpush.msrb.mxu3 %v1377_v18 }
  0x1e   :  { %669 = vmatpush.msrb.mxu2 %v1384_v19  ;;  %741 = vmatpush.msrb.mxu3 %v1384_v19 }
  0x20   :  { %670 = vmatpush.msrb.mxu2 %v1391_v20  ;;  %742 = vmatpush.msrb.mxu3 %v1391_v20 }
  0x22   :  { %671 = vmatpush.msrb.mxu2 %v1396_v21  ;;  %743 = vmatpush.msrb.mxu3 %v1396_v21 }
  0x24   :  { %808 = vmatpush.msra.mxu2 %v1349_v14 }
  0x26   :  { %809 = vmatpush.msra.mxu2 %v1356_v15 }
  0x28   :  { %810 = vmatpush.msra.mxu2 %v1363_v16 }
  0x2a   :  { %811 = vmatpush.msra.mxu2 %v1370_v17 }
  0x2c   :  { %812 = vmatpush.msra.mxu2 %v1377_v18 }
  0x2e   :  { %813 = vmatpush.msra.mxu2 %v1384_v19 }
  0x30   :  { %814 = vmatpush.msra.mxu2 %v1391_v20 }
  0x32   :  { %815 = vmatpush.msra.mxu2 %v1396_v21 }
  0x76   :  { %v44_v9 = vpop.xlane.xlu0 %43 }
  0x77   :  { %v73_v10 = vmul.f32 %v1338_v8, %v44_v9  ;;  %v45_v9 = vsel %vm41_vm0, %v34_v7, 0.0 }
  0x79   :  { %v1341_v11 = vsub.f32 %v33_v0, %v73_v10 }
  0x7b   :  { %v89_v12 = vmul.f32 %v1341_v11, %v1341_v11 }
  0x7d   :  { %v97_v13 = vsel %vm41_vm0, %v89_v12, 0.0  ;;  %v376_v47 = vpop.permute.xlu1 %375 }
  0x7e   :  { %98 = vadd.xlane.f32.xlu0 %v97_v13  ;;  %vm413_vm5 = vcmp.gt.f32.partialorder %v376_v47, 0.5  ;;  %v366_v47 = vld [vmem:[%s1879_s2 + $0x8] sm:$0xff] }
  0x96   :  { %v528_v52 = vpop.f32.mrf.mxu2 }
  0xf1   :  { %v99_v29 = vpop.xlane.xlu0 %98 }
  0xf2   :  { %v121_v30 = vmul.f32 %v99_v29, %v1338_v8 }
  0xf4   :  { %v129_v31 = vadd.f32 1e-05, %v121_v30 }
  0xf6   :  { %1169 = vrsqrt.f32 %v129_v31  ;;  %vm143_vm3 = vweird.f32 %v129_v31 }
  0xfc   :  { %v1170_v32 = vpop.eup %1169 }
  0xfd   :  { %v138_v33 = vmul.f32 %v1170_v32, %v129_v31  ;;  %vm144_vm2 = vweird.f32 %v1170_v32 }
  0xfe   :  { %vm145_vm4 = vmor %vm143_vm3, %vm144_vm2 }
  0xff   :  { %v139_v34 = vmul.f32 %v1170_v32, %v138_v33 }
 0x101   :  { %v140_v35 = vmul.f32 0.5, %v139_v34 }
 0x103   :  { %v141_v36 = vsub.f32 1.5, %v140_v35 }
 0x105   :  { %v142_v37 = vmul.f32 %v1170_v32, %v141_v36 }
 0x107   :  { %v146_v39 = vsel %vm145_vm4, %v1170_v32, %v142_v37 }
 0x108   :  { %v217_v40 = vmul.f32 %v146_v39, %v1341_v11 }
 0x10a   :  { %v229_v42 = vmul.f32 %v1442_v38, %v217_v40 }
 0x10c   :  { %v241_v43 = vadd.f32 %v1449_v41, %v229_v42 }
 0x10e   :  { %1124 = vmatmul.msk.f32.vlgmr.msra.gmra.mxu0 %vm41_vm0, %v241_v43  ;;  %1132 = vmatmul.msk.f32.vlgmr.msra.gmra.mxu1 %vm41_vm0, %v241_v43 }
 0x18b   :  { %v300_v48 = vpop.f32.mrf.mxu0  ;;  %v341_v49 = vpop.f32.mrf.mxu1 }
 0x18c   :  { %v301_v50 = vadd.f32 %v300_v48, %v1460_v45  ;;  %v342_v51 = vadd.f32 %v341_v49, %v1462_v46  ;;  %v485_v49 = vld [vmem:[%s1880_s3] sm:$0xff] }
 0x18d   :  { %vm492_vm14 = vcmp.gt.f32.partialorder %v485_v49, 0.0 }
 0x18e   :  { %v421_v53 = vsel %vm413_vm5, %v301_v50, %v342_v51 }
 0x18f   :  { %v531_v54 = vadd.f32 %v528_v52, %v421_v53 }
 0x191   :  { %1171 = vtanh.f32 %v531_v54  ;;  %v1140_v56 = vmul.f32 -1.442695, %v531_v54 }
 0x193   :  { %1173 = vpow2.f32 %v1140_v56 }
 0x197   :  { %v1172_v55 = vpop.eup %1171 }
 0x198   :  { %554 = vrot.lane.b32.xlu1 %v1172_v55, %s1280_s20 }
 0x199   :  { %v1174_v57 = vpop.eup %1173 }
 0x19a   :  { %v535_v58 = vadd.f32 1.0, %v1174_v57 }
 0x19c   :  { %1175 = vrcp.f32 %v535_v58  ;;  %v547_v0 = vand.u32 2147483648, %v535_v58  ;;  %vm541_vm7 = vweird.f32 %v535_v58  ;;  %v545_v1 = vand.u32 2147483647, %v535_v58 }
 0x19e   :  { %v548_v3 = vor.u32 1.1754944e-38, %v547_v0  ;;  %vm546_vm9 = vcmp.eq.f32.partialorder %v545_v1, 8.507059e+37 }
 0x1a2   :  { %v1176_v59 = vpop.eup %1175 }
 0x1a3   :  { %v537_v60 = vmul.f32 %v1176_v59, %v535_v58  ;;  %vm542_vm6 = vweird.f32 %v1176_v59 }
 0x1a4   :  { %vm543_vm8 = vmor %vm541_vm7, %vm542_vm6 }
 0x1a5   :  { %v538_v61 = vsub.f32 1.0, %v537_v60 }
 0x1a7   :  { %v539_v62 = vmul.f32 %v1176_v59, %v538_v61 }
 0x1a9   :  { %v540_v63 = vadd.f32 %v1176_v59, %v539_v62 }
 0x1ab   :  { %v544_v2 = vsel %vm543_vm8, %v1176_v59, %v540_v63 }
 0x1ac   :  { %v549_v5 = vsel %vm546_vm9, %v548_v3, %v544_v2 }
 0x1ad   :  { %v552_v10 = vmul.f32 0.0, %v549_v5 }
 0x20a   :  { %v555_v4 = vpop.permute.xlu1 %554 }
 0x20b   :  { %v557_v6 = vmul.f32 %v555_v4, %v549_v5 }
 0x20d   :  { %559 = vrot.lane.b32.xlu2 %v557_v6, %s1281_s7 }
 0x236   :  { %46 = vadd.xlane.f32.xlu2 %v45_v9 }
 0x24e   :  { %380 = vperm.xlu2 %1163, %v366_v47  }
 0x267   :  { %v560_v11 = vpop.permute.xlu2 %559 }
 0x268   :  { %v1472_v12 = vadd.f32 %v560_v11, %v552_v10 }
 0x26a   :  { %1177 = vtanh.f32 %v1472_v12 }
 0x270   :  { %v1178_v13 = vpop.eup %1177 }
 0x271   :  { %565 = vrot.lane.b32.xlu0 %v1178_v13, %s1280_s20 }
 0x2a9   :  { %v47_v22 = vpop.xlane.xlu2 %46 }
 0x2aa   :  { %v74_v23 = vmul.f32 %v1338_v8, %v47_v22 }
 0x2ac   :  { %v82_v24 = vsub.f32 %v34_v7, %v74_v23  ;;  %v35_v23 = vld [vmem:[%s1877_s0 + $0x10] sm:$0xff] }
 0x2ae   :  { %v90_v25 = vmul.f32 %v82_v24, %v82_v24 }
 0x2b0   :  { %v100_v26 = vsel %vm41_vm0, %v90_v25, 0.0  ;;  %v430_v25 = vld [vmem:[%s1878_s1 + $0x8] sm:$0xff] }
 0x2b1   :  { %101 = vadd.xlane.f32.xlu1 %v100_v26  ;;  %v381_v55 = vpop.permute.xlu2 %380 }
 0x2b2   :  { %vm414_vm1 = vcmp.gt.f32.partialorder %v381_v55, 0.5 }
 0x2ca   :  { %439 = vperm.xlu1 %1162, %v429_v27  }
 0x2e3   :  { %v566_v28 = vpop.permute.xlu0 %565 }
 0x2e4   :  { %v1481_v29 = vmul.f32 %v566_v28, %v549_v5 }
 0x2e6   :  { %572 = vrot.lane.b32.xlu0 %v1481_v29, %s1281_s7 }
 0x2ee   :  { %575 = vrot.lane.b32.xlu0 %v1481_v29, %s1280_s20 }
 0x324   :  { %v102_v30 = vpop.xlane.xlu1 %101 }
 0x325   :  { %v122_v31 = vmul.f32 %v102_v30, %v1338_v8 }
 0x327   :  { %v130_v32 = vadd.f32 1e-05, %v122_v31 }
 0x329   :  { %1179 = vrsqrt.f32 %v130_v32  ;;  %vm153_vm10 = vweird.f32 %v130_v32 }
 0x32f   :  { %v1180_v33 = vpop.eup %1179 }
 0x330   :  { %v148_v34 = vmul.f32 %v1180_v33, %v130_v32  ;;  %vm154_vm11 = vweird.f32 %v1180_v33 }
 0x331   :  { %vm155_vm12 = vmor %vm153_vm10, %vm154_vm11 }
 0x332   :  { %v149_v35 = vmul.f32 %v1180_v33, %v148_v34 }
 0x334   :  { %v150_v36 = vmul.f32 0.5, %v149_v35 }
 0x336   :  { %v151_v37 = vsub.f32 1.5, %v150_v36 }
 0x338   :  { %v152_v39 = vmul.f32 %v1180_v33, %v151_v37 }
 0x33a   :  { %v156_v40 = vsel %vm155_vm12, %v1180_v33, %v152_v39 }
 0x33b   :  { %v218_v42 = vmul.f32 %v156_v40, %v82_v24  ;;  %v48_v24 = vsel %vm41_vm0, %v35_v23, 0.0 }
 0x33c   :  { %v1522_v26 = vpop.permute.xlu1 %439 }
 0x33d   :  { %v230_v43 = vmul.f32 %v1442_v38, %v218_v42  ;;  %vm477_vm6 = vcmp.gt.f32.partialorder %v1522_v26, 0.0 }
 0x33e   :  { %v1528_v27 = vsel %vm477_vm6, %v1472_v12, 0.0 }
 0x33f   :  { %v242_v44 = vadd.f32 %v1449_v41, %v230_v43  ;;  %v367_v43 = vld [vmem:[%s1879_s2 + $0x10] sm:$0xff] }
 0x341   :  { %1125 = vmatmul.msk.f32.gmra.mxu0 %vm41_vm0, %v242_v44  ;;  %1133 = vmatmul.msk.f32.gmra.mxu1 %vm41_vm0, %v242_v44 }
 0x358   :  { %v573_v48 = vpop.permute.xlu0 %572 }
 0x360   :  { %v576_v50 = vpop.permute.xlu0 %575 }
 0x361   :  { %v579_v51 = vsel %vm578_vm13, %v573_v48, %v576_v50 }
 0x362   :  { %v1499_v52 = vsel %vm492_vm14, %v579_v51, 0.0 }
 0x363   :  { %1141 = vmatmul.msk.f32.vlgmr.msra.gmra.mxu3 %vm507_vm15, %v1499_v52 }
 0x364   :  { %880 = vmatpush.msra.mxu3 %v1349_v14 }
 0x366   :  { %881 = vmatpush.msra.mxu3 %v1356_v15 }
 0x368   :  { %882 = vmatpush.msra.mxu3 %v1363_v16 }
 0x36a   :  { %883 = vmatpush.msra.mxu3 %v1370_v17 }
 0x36c   :  { %884 = vmatpush.msra.mxu3 %v1377_v18 }
 0x36e   :  { %885 = vmatpush.msra.mxu3 %v1384_v19 }
 0x370   :  { %886 = vmatpush.msra.mxu3 %v1391_v20 }
 0x372   :  { %887 = vmatpush.msra.mxu3 %v1396_v21 }
 0x3be   :  { %v303_v53 = vpop.f32.mrf.mxu0  ;;  %v344_v54 = vpop.f32.mrf.mxu1 }
 0x3bf   :  { %v304_v56 = vadd.f32 %v303_v53, %v1460_v45  ;;  %v345_v57 = vadd.f32 %v344_v54, %v1462_v46 }
 0x3c1   :  { %v422_v58 = vsel %vm414_vm1, %v304_v56, %v345_v57 }
 0x3e6   :  { %v601_v59 = vpop.f32.mrf.mxu3 }
 0x3e7   :  { %v604_v60 = vadd.f32 %v601_v59, %v422_v58 }
 0x3e9   :  { %1181 = vtanh.f32 %v604_v60  ;;  %v1142_v62 = vmul.f32 -1.442695, %v604_v60 }
 0x3eb   :  { %1183 = vpow2.f32 %v1142_v62 }
 0x3ef   :  { %v1182_v61 = vpop.eup %1181 }
 0x3f0   :  { %627 = vrot.lane.b32.xlu0 %v1182_v61, %s1280_s20  ;;  %v486_v61 = vld [vmem:[%s1880_s3 + $0x8] sm:$0xff] }
 0x3f1   :  { %v1184_v63 = vpop.eup %1183  ;;  %vm493_vm11 = vcmp.gt.f32.partialorder %v486_v61, 0.0 }
 0x3f2   :  { %v608_v0 = vadd.f32 1.0, %v1184_v63 }
 0x3f4   :  { %1185 = vrcp.f32 %v608_v0  ;;  %v620_v6 = vand.u32 2147483648, %v608_v0  ;;  %vm614_vm3 = vweird.f32 %v608_v0  ;;  %v618_v7 = vand.u32 2147483647, %v608_v0 }
 0x3f6   :  { %v621_v10 = vor.u32 1.1754944e-38, %v620_v6  ;;  %vm619_vm5 = vcmp.eq.f32.partialorder %v618_v7, 8.507059e+37 }
 0x3fa   :  { %v1186_v1 = vpop.eup %1185 }
 0x3fb   :  { %v610_v2 = vmul.f32 %v1186_v1, %v608_v0  ;;  %vm615_vm2 = vweird.f32 %v1186_v1 }
 0x3fc   :  { %vm616_vm4 = vmor %vm614_vm3, %vm615_vm2 }
 0x3fd   :  { %v611_v3 = vsub.f32 1.0, %v610_v2 }
 0x3ff   :  { %v612_v4 = vmul.f32 %v1186_v1, %v611_v3 }
 0x401   :  { %v613_v5 = vadd.f32 %v1186_v1, %v612_v4 }
 0x403   :  { %v617_v9 = vsel %vm616_vm4, %v1186_v1, %v613_v5  ;;  %v36_v1 = vld [vmem:[%s1877_s0 + $0x18] sm:$0xff] }
 0x404   :  { %v622_v13 = vsel %vm619_vm5, %v621_v10, %v617_v9  ;;  %v51_v2 = vsel %vm41_vm0, %v36_v1, 0.0 }
 0x405   :  { %v625_v28 = vmul.f32 %v622_v13, %v1528_v27 }
 0x462   :  { %v628_v11 = vpop.permute.xlu0 %627 }
 0x463   :  { %v630_v22 = vmul.f32 %v628_v11, %v622_v13 }
 0x465   :  { %632 = vrot.lane.b32.xlu0 %v630_v22, %s1281_s7  ;;  %v1584_v22 = vld [vmem:[%s1877_s0 + $0x20] sm:$0xff] }
 0x48f   :  { %49 = vadd.xlane.f32.xlu0 %v48_v24  ;;  %v432_v24 = vld [vmem:[%s1878_s1 + $0x18] sm:$0xff] }
 0x4a3   :  { %444 = vperm.xlu0 %1164, %v430_v25  }
 0x4d7   :  { %v633_v30 = vpop.permute.xlu0 %632 }
 0x4d8   :  { %v1531_v31 = vadd.f32 %v633_v30, %v625_v28 }
 0x4da   :  { %1187 = vtanh.f32 %v1531_v31 }
 0x4e0   :  { %v1188_v32 = vpop.eup %1187 }
 0x4e1   :  { %638 = vrot.lane.b32.xlu2 %v1188_v32, %s1280_s20 }
 0x502   :  { %v50_v33 = vpop.xlane.xlu0 %49 }
 0x503   :  { %v75_v34 = vmul.f32 %v1338_v8, %v50_v33 }
 0x505   :  { %v83_v35 = vsub.f32 %v35_v23, %v75_v34  ;;  %v54_v23 = vsel %vm41_vm0, %v1584_v22, 0.0 }
 0x507   :  { %v91_v36 = vmul.f32 %v83_v35, %v83_v35 }
 0x509   :  { %v103_v37 = vsel %vm41_vm0, %v91_v36, 0.0 }
 0x50a   :  { %104 = vadd.xlane.f32.xlu2 %v103_v37 }
 0x512   :  { %52 = vadd.xlane.f32.xlu2 %v51_v2 }
 0x515   :  { %v1537_v12 = vpop.permute.xlu0 %444 }
 0x516   :  { %vm478_vm7 = vcmp.gt.f32.partialorder %v1537_v12, 0.0  ;;  %v368_v12 = vld [vmem:[%s1879_s2 + $0x18] sm:$0xff] }
 0x53b   :  { %v639_v39 = vpop.permute.xlu2 %638 }
 0x53c   :  { %v641_v40 = vmul.f32 %v639_v39, %v622_v13 }
 0x53e   :  { %645 = vrot.lane.b32.xlu1 %v641_v40, %s1281_s7  ;;  %v1543_v42 = vsel %vm478_vm7, %v641_v40, 0.0 }
 0x546   :  { %648 = vrot.lane.b32.xlu1 %v641_v40, %s1280_s20 }
 0x54e   :  { %385 = vperm.xlu1 %1162, %v367_v43  }
 0x57d   :  { %v105_v44 = vpop.xlane.xlu2 %104 }
 0x57e   :  { %v123_v47 = vmul.f32 %v105_v44, %v1338_v8 }
 0x580   :  { %v131_v48 = vadd.f32 1e-05, %v123_v47 }
 0x582   :  { %1189 = vrsqrt.f32 %v131_v48  ;;  %vm163_vm8 = vweird.f32 %v131_v48 }
 0x585   :  { %v53_v32 = vpop.xlane.xlu2 %52 }
 0x586   :  { %v76_v33 = vmul.f32 %v1338_v8, %v53_v32 }
 0x588   :  { %v1190_v49 = vpop.eup %1189 }
 0x589   :  { %v158_v50 = vmul.f32 %v1190_v49, %v131_v48  ;;  %vm164_vm9 = vweird.f32 %v1190_v49 }
 0x58a   :  { %vm165_vm10 = vmor %vm163_vm8, %vm164_vm9 }
 0x58b   :  { %v159_v51 = vmul.f32 %v1190_v49, %v158_v50 }
 0x58d   :  { %v160_v53 = vmul.f32 0.5, %v159_v51 }
 0x58f   :  { %v161_v54 = vsub.f32 1.5, %v160_v53 }
 0x591   :  { %v162_v55 = vmul.f32 %v1190_v49, %v161_v54 }
 0x593   :  { %v166_v56 = vsel %vm165_vm10, %v1190_v49, %v162_v55 }
 0x594   :  { %v219_v57 = vmul.f32 %v166_v56, %v83_v35  ;;  %v84_v35 = vsub.f32 %v36_v1, %v76_v33 }
 0x596   :  { %v231_v58 = vmul.f32 %v1442_v38, %v219_v57  ;;  %v92_v36 = vmul.f32 %v84_v35, %v84_v35 }
 0x598   :  { %v243_v59 = vadd.f32 %v1449_v41, %v231_v58  ;;  %v106_v39 = vsel %vm41_vm0, %v92_v36, 0.0 }
 0x599   :  { %107 = vadd.xlane.f32.xlu2 %v106_v39 }
 0x59a   :  { %1126 = vmatmul.msk.f32.gmra.mxu0 %vm41_vm0, %v243_v59  ;;  %1134 = vmatmul.msk.f32.gmra.mxu1 %vm41_vm0, %v243_v59 }
 0x5b0   :  { %v646_v60 = vpop.permute.xlu1 %645 }
 0x5b8   :  { %v649_v62 = vpop.permute.xlu1 %648 }
 0x5b9   :  { %v651_v63 = vsel %vm578_vm13, %v646_v60, %v649_v62  ;;  %v1599_v62 = vsel %vm478_vm7, %v1531_v31, %v1528_v27 }
 0x5ba   :  { %v1559_v0 = vsel %vm493_vm11, %v651_v63, %v1499_v52  ;;  %v431_v52 = vld [vmem:[%s1878_s1 + $0x10] sm:$0xff] }
 0x5bb   :  { %1143 = vmatmul.msk.f32.vlgmr.msrb.gmra.mxu2 %vm507_vm15, %v1559_v0  ;;  %449 = vperm.xlu0 %1164, %v431_v52  }
 0x5bc   :  { %952 = vmatpush.msrb.mxu2 %v1349_v14 }
 0x5be   :  { %953 = vmatpush.msrb.mxu2 %v1356_v15 }
 0x5c0   :  { %954 = vmatpush.msrb.mxu2 %v1363_v16  ;;  %v386_v5 = vpop.permute.xlu1 %385 }
 0x5c1   :  { %vm415_vm12 = vcmp.gt.f32.partialorder %v386_v5, 0.5 }
 0x5c2   :  { %955 = vmatpush.msrb.mxu2 %v1370_v17 }
 0x5c4   :  { %956 = vmatpush.msrb.mxu2 %v1377_v18 }
 0x5c6   :  { %957 = vmatpush.msrb.mxu2 %v1384_v19 }
 0x5c8   :  { %958 = vmatpush.msrb.mxu2 %v1391_v20 }
 0x5ca   :  { %959 = vmatpush.msrb.mxu2 %v1396_v21 }
 0x5e5   :  { %55 = vadd.xlane.f32.xlu0 %v54_v23 }
 0x5f9   :  { %454 = vperm.xlu0 %1164, %v432_v24  }
 0x60c   :  { %v108_v55 = vpop.xlane.xlu2 %107 }
 0x60d   :  { %v124_v56 = vmul.f32 %v108_v55, %v1338_v8 }
 0x60f   :  { %v132_v57 = vadd.f32 1e-05, %v124_v56  ;;  %v38_v56 = vld [vmem:[%s1877_s0 + $0x28] sm:$0xff] }
 0x611   :  { %vm173_vm4 = vweird.f32 %v132_v57 }
 0x617   :  { %v306_v3 = vpop.f32.mrf.mxu0  ;;  %v347_v4 = vpop.f32.mrf.mxu1 }
 0x618   :  { %v307_v6 = vadd.f32 %v306_v3, %v1460_v45  ;;  %v348_v7 = vadd.f32 %v347_v4, %v1462_v46 }
 0x61a   :  { %v423_v9 = vsel %vm415_vm12, %v307_v6, %v348_v7 }
 0x63e   :  { %v673_v10 = vpop.f32.mrf.mxu2 }
 0x63f   :  { %v676_v11 = vadd.f32 %v673_v10, %v423_v9  ;;  %v487_v10 = vld [vmem:[%s1880_s3 + $0x10] sm:$0xff] }
 0x640   :  { %vm494_vm7 = vcmp.gt.f32.partialorder %v487_v10, 0.0 }
 0x641   :  { %1191 = vtanh.f32 %v676_v11  ;;  %v1144_v25 = vmul.f32 -1.442695, %v676_v11 }
 0x643   :  { %1193 = vpow2.f32 %v1144_v25 }
 0x647   :  { %v1192_v13 = vpop.eup %1191 }
 0x648   :  { %699 = vrot.lane.b32.xlu1 %v1192_v13, %s1280_s20 }
 0x649   :  { %v1194_v28 = vpop.eup %1193 }
 0x64a   :  { %v680_v30 = vadd.f32 1.0, %v1194_v28 }
 0x64c   :  { %1195 = vrcp.f32 %v680_v30  ;;  %v692_v47 = vand.u32 2147483648, %v680_v30  ;;  %vm686_vm1 = vweird.f32 %v680_v30  ;;  %v690_v48 = vand.u32 2147483647, %v680_v30 }
 0x64d   :  { %1197 = vrsqrt.f32 %v132_v57 }
 0x64e   :  { %v693_v50 = vor.u32 1.1754944e-38, %v692_v47  ;;  %vm691_vm3 = vcmp.eq.f32.partialorder %v690_v48, 8.507059e+37 }
 0x652   :  { %v1196_v34 = vpop.eup %1195 }
 0x653   :  { %v682_v37 = vmul.f32 %v1196_v34, %v680_v30  ;;  %vm687_vm14 = vweird.f32 %v1196_v34  ;;  %v1198_v58 = vpop.eup %1197 }
 0x654   :  { %vm688_vm2 = vmor %vm686_vm1, %vm687_vm14  ;;  %v168_v59 = vmul.f32 %v1198_v58, %v132_v57  ;;  %vm174_vm5 = vweird.f32 %v1198_v58  ;;  %v57_v57 = vsel %vm41_vm0, %v38_v56, 0.0 }
 0x655   :  { %v683_v40 = vsub.f32 1.0, %v682_v37  ;;  %vm175_vm8 = vmor %vm173_vm4, %vm174_vm5 }
 0x656   :  { %v169_v60 = vmul.f32 %v1198_v58, %v168_v59 }
 0x657   :  { %v684_v43 = vmul.f32 %v1196_v34, %v683_v40 }
 0x658   :  { %v170_v61 = vmul.f32 0.5, %v169_v60 }
 0x659   :  { %v685_v44 = vadd.f32 %v1196_v34, %v684_v43 }
 0x65a   :  { %v171_v52 = vsub.f32 1.5, %v170_v61 }
 0x65b   :  { %v689_v49 = vsel %vm688_vm2, %v1196_v34, %v685_v44 }
 0x65c   :  { %v694_v53 = vsel %vm691_vm3, %v693_v50, %v689_v49  ;;  %v172_v3 = vmul.f32 %v1198_v58, %v171_v52  ;;  %v1640_v49 = vpop.permute.xlu0 %449 }
 0x65d   :  { %v697_v63 = vmul.f32 %v694_v53, %v1599_v62  ;;  %vm479_vm1 = vcmp.gt.f32.partialorder %v1640_v49, 0.0 }
 0x65e   :  { %v176_v4 = vsel %vm175_vm8, %v1198_v58, %v172_v3 }
 0x65f   :  { %v220_v5 = vmul.f32 %v176_v4, %v84_v35 }
 0x661   :  { %v232_v6 = vmul.f32 %v1442_v38, %v220_v5 }
 0x663   :  { %v244_v7 = vadd.f32 %v1449_v41, %v232_v6 }
 0x664   :  { %v56_v50 = vpop.xlane.xlu0 %55 }
 0x665   :  { %1127 = vmatmul.msk.f32.gmra.mxu0 %vm41_vm0, %v244_v7  ;;  %1135 = vmatmul.msk.f32.gmra.mxu1 %vm41_vm0, %v244_v7 }
 0x6ba   :  { %v700_v51 = vpop.permute.xlu1 %699 }
 0x6bb   :  { %v702_v54 = vmul.f32 %v700_v51, %v694_v53  ;;  %v77_v51 = vmul.f32 %v1338_v8, %v56_v50 }
 0x6bd   :  { %704 = vrot.lane.b32.xlu1 %v702_v54, %s1281_s7 }
 0x6e2   :  { %v309_v25 = vpop.f32.mrf.mxu0  ;;  %v350_v28 = vpop.f32.mrf.mxu1 }
 0x72f   :  { %v705_v1 = vpop.permute.xlu1 %704 }
 0x730   :  { %v1602_v2 = vadd.f32 %v705_v1, %v697_v63 }
 0x732   :  { %1199 = vtanh.f32 %v1602_v2  ;;  %v1654_v58 = vsel %vm479_vm1, %v1602_v2, %v1599_v62 }
 0x738   :  { %v1200_v9 = vpop.eup %1199 }
 0x739   :  { %710 = vrot.lane.b32.xlu1 %v1200_v9, %s1280_s20 }
 0x7ab   :  { %v711_v27 = vpop.permute.xlu1 %710 }
 0x7ac   :  { %v1610_v31 = vmul.f32 %v711_v27, %v694_v53  ;;  %v85_v53 = vsub.f32 %v1584_v22, %v77_v51 }
 0x7ae   :  { %717 = vrot.lane.b32.xlu1 %v1610_v31, %s1281_s7  ;;  %720 = vrot.lane.b32.xlu2 %v1610_v31, %s1280_s20  ;;  %v93_v54 = vmul.f32 %v85_v53, %v85_v53 }
 0x7b0   :  { %v109_v55 = vsel %vm41_vm0, %v93_v54, 0.0 }
 0x7b6   :  { %390 = vperm.xlu1 %1162, %v368_v12  }
 0x808   :  { %v721_v11 = vpop.permute.xlu2 %720 }
 0x820   :  { %v718_v13 = vpop.permute.xlu1 %717 }
 0x821   :  { %v723_v23 = vsel %vm578_vm13, %v718_v13, %v721_v11 }
 0x822   :  { %v1624_v24 = vsel %vm494_vm7, %v723_v23, %v1559_v0 }
 0x823   :  { %1145 = vmatmul.msk.f32.vlgmr.msrb.gmra.mxu3 %vm507_vm15, %v1624_v24 }
 0x824   :  { %1024 = vmatpush.msrb.mxu3 %v1349_v14  ;;  %v310_v14 = vadd.f32 %v309_v25, %v1460_v45  ;;  %v370_v25 = vld [vmem:[%s1879_s2 + $0x28] sm:$0xff] }
 0x826   :  { %1025 = vmatpush.msrb.mxu3 %v1356_v15  ;;  %v351_v15 = vadd.f32 %v350_v28, %v1462_v46 }
 0x828   :  { %1026 = vmatpush.msrb.mxu3 %v1363_v16  ;;  %v391_v0 = vpop.permute.xlu1 %390 }
 0x829   :  { %vm416_vm9 = vcmp.gt.f32.partialorder %v391_v0, 0.5 }
 0x82a   :  { %1027 = vmatpush.msrb.mxu3 %v1370_v17  ;;  %v424_v30 = vsel %vm416_vm9, %v310_v14, %v351_v15  ;;  %v369_v15 = vld [vmem:[%s1879_s2 + $0x20] sm:$0xff] }
 0x82c   :  { %1028 = vmatpush.msrb.mxu3 %v1377_v18 }
 0x82e   :  { %1029 = vmatpush.msrb.mxu3 %v1384_v19 }
 0x830   :  { %1030 = vmatpush.msrb.mxu3 %v1391_v20 }
 0x832   :  { %1031 = vmatpush.msrb.mxu3 %v1396_v21 }
 0x8a6   :  { %v745_v16 = vpop.f32.mrf.mxu3 }
 0x8a7   :  { %v748_v32 = vadd.f32 %v745_v16, %v424_v30 }
 0x8a9   :  { %1201 = vtanh.f32 %v748_v32  ;;  %v1146_v18 = vmul.f32 -1.442695, %v748_v32 }
 0x8ab   :  { %1203 = vpow2.f32 %v1146_v18 }
 0x8af   :  { %v1202_v17 = vpop.eup %1201 }
 0x8b0   :  { %771 = vrot.lane.b32.xlu1 %v1202_v17, %s1280_s20 }
 0x8b1   :  { %v1204_v19 = vpop.eup %1203 }
 0x8b2   :  { %v752_v20 = vadd.f32 1.0, %v1204_v19 }
 0x8b4   :  { %1205 = vrcp.f32 %v752_v20  ;;  %v764_v37 = vand.u32 2147483648, %v752_v20  ;;  %vm758_vm11 = vweird.f32 %v752_v20  ;;  %v762_v39 = vand.u32 2147483647, %v752_v20 }
 0x8b6   :  { %v765_v43 = vor.u32 1.1754944e-38, %v764_v37  ;;  %vm763_vm14 = vcmp.eq.f32.partialorder %v762_v39, 8.507059e+37 }
 0x8ba   :  { %v1206_v21 = vpop.eup %1205 }
 0x8bb   :  { %v754_v33 = vmul.f32 %v1206_v21, %v752_v20  ;;  %vm759_vm10 = vweird.f32 %v1206_v21 }
 0x8bc   :  { %vm760_vm12 = vmor %vm758_vm11, %vm759_vm10 }
 0x8bd   :  { %v755_v34 = vsub.f32 1.0, %v754_v33 }
 0x8bf   :  { %v756_v35 = vmul.f32 %v1206_v21, %v755_v34 }
 0x8c1   :  { %v757_v36 = vadd.f32 %v1206_v21, %v756_v35 }
 0x8c3   :  { %v761_v40 = vsel %vm760_vm12, %v1206_v21, %v757_v36  ;;  %v488_v36 = vld [vmem:[%s1880_s3 + $0x18] sm:$0xff] }
 0x8c4   :  { %v766_v47 = vsel %vm763_vm14, %v765_v43, %v761_v40  ;;  %vm495_vm9 = vcmp.gt.f32.partialorder %v488_v36, 0.0 }
 0x8c5   :  { %v769_v22 = vmul.f32 %v766_v47, %v1654_v58 }
 0x922   :  { %v772_v44 = vpop.permute.xlu1 %771 }
 0x923   :  { %v774_v48 = vmul.f32 %v772_v44, %v766_v47 }
 0x925   :  { %776 = vrot.lane.b32.xlu1 %v774_v48, %s1281_s7 }
 0x94f   :  { %110 = vadd.xlane.f32.xlu1 %v109_v55 }
 0x957   :  { %58 = vadd.xlane.f32.xlu1 %v57_v57 }
 0x997   :  { %v777_v59 = vpop.permute.xlu1 %776 }
 0x998   :  { %v1657_v60 = vadd.f32 %v777_v59, %v769_v22 }
 0x99a   :  { %1207 = vtanh.f32 %v1657_v60 }
 0x9a0   :  { %v1208_v61 = vpop.eup %1207 }
 0x9a1   :  { %782 = vrot.lane.b32.xlu2 %v1208_v61, %s1280_s20 }
 0x9c2   :  { %v111_v63 = vpop.xlane.xlu1 %110 }
 0x9c3   :  { %v125_v52 = vmul.f32 %v111_v63, %v1338_v8 }
 0x9c5   :  { %v133_v1 = vadd.f32 1e-05, %v125_v52 }
 0x9c7   :  { %1209 = vrsqrt.f32 %v133_v1  ;;  %vm183_vm2 = vweird.f32 %v133_v1 }
 0x9ca   :  { %v59_v3 = vpop.xlane.xlu1 %58 }
 0x9cb   :  { %v78_v4 = vmul.f32 %v1338_v8, %v59_v3 }
 0x9cd   :  { %v1210_v62 = vpop.eup %1209  ;;  %v86_v2 = vsub.f32 %v38_v56, %v78_v4 }
 0x9ce   :  { %v178_v5 = vmul.f32 %v1210_v62, %v133_v1  ;;  %vm184_vm3 = vweird.f32 %v1210_v62 }
 0x9cf   :  { %v94_v6 = vmul.f32 %v86_v2, %v86_v2  ;;  %vm185_vm4 = vmor %vm183_vm2, %vm184_vm3 }
 0x9d0   :  { %v179_v7 = vmul.f32 %v1210_v62, %v178_v5 }
 0x9d1   :  { %v112_v9 = vsel %vm41_vm0, %v94_v6, 0.0 }
 0x9d2   :  { %v180_v27 = vmul.f32 0.5, %v179_v7  ;;  %113 = vadd.xlane.f32.xlu1 %v112_v9  ;;  %v1698_v9 = vpop.permute.xlu0 %454 }
 0x9d3   :  { %vm480_vm3 = vcmp.gt.f32.partialorder %v1698_v9, 0.0 }
 0x9d4   :  { %v181_v12 = vsub.f32 1.5, %v180_v27  ;;  %v1705_v27 = vsel %vm480_vm3, %v1657_v60, %v1654_v58  ;;  %v433_v58 = vld [vmem:[%s1878_s1 + $0x20] sm:$0xff]  ;;  %v39_v60 = vld [vmem:[%s1877_s0 + $0x30] sm:$0xff] }
 0x9d6   :  { %v182_v10 = vmul.f32 %v1210_v62, %v181_v12 }
 0x9d8   :  { %v186_v11 = vsel %vm185_vm4, %v1210_v62, %v182_v10 }
 0x9d9   :  { %v221_v13 = vmul.f32 %v186_v11, %v85_v53 }
 0x9db   :  { %v233_v23 = vmul.f32 %v1442_v38, %v221_v13 }
 0x9dd   :  { %v245_v0 = vadd.f32 %v1449_v41, %v233_v23 }
 0x9df   :  { %1128 = vmatmul.msk.f32.gmra.mxu0 %vm41_vm0, %v245_v0  ;;  %1136 = vmatmul.msk.f32.gmra.mxu1 %vm41_vm0, %v245_v0 }
 0x9eb   :  { %400 = vperm.xlu1 %1162, %v370_v25   ;;  %v60_v25 = vsel %vm41_vm0, %v39_v60, 0.0 }
 0x9fb   :  { %v783_v28 = vpop.permute.xlu2 %782 }
 0x9fc   :  { %v1671_v14 = vmul.f32 %v783_v28, %v766_v47  ;;  %v434_v28 = vld [vmem:[%s1878_s1 + $0x28] sm:$0xff] }
 0x9fe   :  { %789 = vrot.lane.b32.xlu2 %v1671_v14, %s1281_s7 }
 0xa06   :  { %792 = vrot.lane.b32.xlu2 %v1671_v14, %s1280_s20 }
 0xa0e   :  { %395 = vperm.xlu2 %1163, %v369_v15   ;;  %v489_v15 = vld [vmem:[%s1880_s3 + $0x20] sm:$0xff] }
 0xa0f   :  { %vm496_vm4 = vcmp.gt.f32.partialorder %v489_v15, 0.0 }
 0xa45   :  { %v114_v30 = vpop.xlane.xlu1 %113 }
 0xa46   :  { %v126_v16 = vmul.f32 %v114_v30, %v1338_v8 }
 0xa48   :  { %v134_v32 = vadd.f32 1e-05, %v126_v16 }
 0xa4a   :  { %1211 = vrsqrt.f32 %v134_v32  ;;  %vm193_vm5 = vweird.f32 %v134_v32 }
 0xa50   :  { %v1212_v17 = vpop.eup %1211 }
 0xa51   :  { %v188_v18 = vmul.f32 %v1212_v17, %v134_v32  ;;  %vm194_vm8 = vweird.f32 %v1212_v17 }
 0xa52   :  { %vm195_vm7 = vmor %vm193_vm5, %vm194_vm8 }
 0xa53   :  { %v189_v19 = vmul.f32 %v1212_v17, %v188_v18 }
 0xa55   :  { %v190_v20 = vmul.f32 0.5, %v189_v19 }
 0xa57   :  { %v191_v21 = vsub.f32 1.5, %v190_v20 }
 0xa58   :  { %v790_v33 = vpop.permute.xlu2 %789 }
 0xa59   :  { %v192_v34 = vmul.f32 %v1212_v17, %v191_v21 }
 0xa5b   :  { %v196_v35 = vsel %vm195_vm7, %v1212_v17, %v192_v34 }
 0xa5c   :  { %v222_v37 = vmul.f32 %v196_v35, %v86_v2  ;;  %v312_v50 = vpop.f32.mrf.mxu0  ;;  %v353_v51 = vpop.f32.mrf.mxu1  ;;  %v40_v35 = vld [vmem:[%s1877_s0 + $0x38] sm:$0xff] }
 0xa5d   :  { %v63_v36 = vsel %vm41_vm0, %v40_v35, 0.0 }
 0xa5e   :  { %v234_v39 = vmul.f32 %v1442_v38, %v222_v37  ;;  %v313_v38 = vadd.f32 %v312_v50, %v1460_v45 }
 0xa60   :  { %v793_v40 = vpop.permute.xlu2 %792  ;;  %v246_v43 = vadd.f32 %v1449_v41, %v234_v39  ;;  %v354_v41 = vadd.f32 %v353_v51, %v1462_v46 }
 0xa61   :  { %v795_v44 = vsel %vm578_vm13, %v790_v33, %v793_v40  ;;  %v401_v40 = vpop.permute.xlu1 %400 }
 0xa62   :  { %v1688_v47 = vsel %vm495_vm9, %v795_v44, %v1624_v24  ;;  %1129 = vmatmul.msk.f32.gmra.mxu0 %vm41_vm0, %v246_v43  ;;  %1137 = vmatmul.msk.f32.gmra.mxu1 %vm41_vm0, %v246_v43  ;;  %vm418_vm5 = vcmp.gt.f32.partialorder %v401_v40, 0.5 }
 0xa63   :  { %1147 = vmatmul.msk.f32.vlgmr.msra.gmra.mxu2 %vm507_vm15, %v1688_v47 }
 0xa68   :  { %v396_v48 = vpop.permute.xlu2 %395 }
 0xa69   :  { %vm417_vm10 = vcmp.gt.f32.partialorder %v396_v48, 0.5 }
 0xa6a   :  { %v425_v53 = vsel %vm417_vm10, %v313_v38, %v354_v41 }
 0xadf   :  { %v315_v37 = vpop.f32.mrf.mxu0  ;;  %v356_v39 = vpop.f32.mrf.mxu1 }
 0xae0   :  { %v316_v43 = vadd.f32 %v315_v37, %v1460_v45  ;;  %v357_v44 = vadd.f32 %v356_v39, %v1462_v46 }
 0xae6   :  { %v817_v54 = vpop.f32.mrf.mxu2 }
 0xae7   :  { %v820_v55 = vadd.f32 %v817_v54, %v425_v53 }
 0xae9   :  { %1213 = vtanh.f32 %v820_v55  ;;  %v1148_v56 = vmul.f32 -1.442695, %v820_v55 }
 0xaeb   :  { %1215 = vpow2.f32 %v1148_v56 }
 0xaef   :  { %v1214_v24 = vpop.eup %1213 }
 0xaf0   :  { %843 = vrot.lane.b32.xlu2 %v1214_v24, %s1280_s20 }
 0xaf1   :  { %v1216_v57 = vpop.eup %1215 }
 0xaf2   :  { %v824_v22 = vadd.f32 1.0, %v1216_v57 }
 0xaf4   :  { %1217 = vrcp.f32 %v824_v22  ;;  %v836_v3 = vand.u32 2147483648, %v824_v22  ;;  %vm830_vm12 = vweird.f32 %v824_v22  ;;  %v834_v4 = vand.u32 2147483647, %v824_v22 }
 0xaf6   :  { %v837_v2 = vor.u32 1.1754944e-38, %v836_v3  ;;  %vm835_vm2 = vcmp.eq.f32.partialorder %v834_v4, 8.507059e+37 }
 0xafa   :  { %v1218_v59 = vpop.eup %1217 }
 0xafb   :  { %v826_v61 = vmul.f32 %v1218_v59, %v824_v22  ;;  %vm831_vm11 = vweird.f32 %v1218_v59 }
 0xafc   :  { %vm832_vm14 = vmor %vm830_vm12, %vm831_vm11 }
 0xafd   :  { %v827_v63 = vsub.f32 1.0, %v826_v61  ;;  %v372_v61 = vld [vmem:[%s1879_s2 + $0x38] sm:$0xff] }
 0xaff   :  { %v828_v52 = vmul.f32 %v1218_v59, %v827_v63 }
 0xb01   :  { %v829_v1 = vadd.f32 %v1218_v59, %v828_v52 }
 0xb03   :  { %v833_v62 = vsel %vm832_vm14, %v1218_v59, %v829_v1 }
 0xb04   :  { %v838_v6 = vsel %vm835_vm2, %v837_v2, %v833_v62  ;;  %v714_v2 = vsel %vm479_vm1, %v1610_v31, 0.0 }
 0xb05   :  { %v841_v12 = vmul.f32 %v838_v6, %v1705_v27 }
 0xb4a   :  { %v844_v5 = vpop.permute.xlu2 %843 }
 0xb4b   :  { %v846_v7 = vmul.f32 %v844_v5, %v838_v6 }
 0xb4d   :  { %848 = vrot.lane.b32.xlu2 %v846_v7, %s1281_s7 }
 0xba7   :  { %v849_v10 = vpop.permute.xlu2 %848 }
 0xba8   :  { %v1708_v11 = vadd.f32 %v849_v10, %v841_v12 }
 0xbaa   :  { %1219 = vtanh.f32 %v1708_v11 }
 0xbb0   :  { %v1220_v13 = vpop.eup %1219 }
 0xbb1   :  { %854 = vrot.lane.b32.xlu2 %v1220_v13, %s1280_s20 }
 0xc0b   :  { %v855_v23 = vpop.permute.xlu2 %854 }
 0xc0c   :  { %v1712_v0 = vmul.f32 %v855_v23, %v838_v6 }
 0xc0e   :  { %864 = vrot.lane.b32.xlu0 %v1712_v0, %s1280_s20  ;;  %861 = vrot.lane.b32.xlu2 %v1712_v0, %s1281_s7 }
 0xc16   :  { %459 = vperm.xlu0 %1164, %v433_v58  }
 0xc40   :  { %61 = vadd.xlane.f32.xlu0 %v60_v25 }
 0xc54   :  { %464 = vperm.xlu0 %1164, %v434_v28  }
 0xc68   :  { %v862_v30 = vpop.permute.xlu2 %861 }
 0xc80   :  { %v865_v16 = vpop.permute.xlu0 %864 }
 0xc81   :  { %v867_v32 = vsel %vm578_vm13, %v862_v30, %v865_v16  ;;  %v1249_v30 = vld [vmem:[%s1881_s4] ss:$0 sm:$0xff] }
 0xc82   :  { %v1733_v17 = vsel %vm496_vm4, %v867_v32, %v1688_v47  ;;  %v426_v47 = vsel %vm418_vm5, %v316_v43, %v357_v44  ;;  %v1250_v32 = vld [vmem:[%s1882_s5] ss:$0 sm:$0xff] }
 0xc83   :  { %1149 = vmatmul.msk.f32.vlgmr.msra.gmra.mxu3 %vm507_vm15, %v1733_v17 }
 0xc88   :  { %v1737_v18 = vpop.permute.xlu0 %459 }
 0xc89   :  { %vm481_vm4 = vcmp.gt.f32.partialorder %v1737_v18, 0.0 }
 0xc8a   :  { %v1784_v40 = vsel %vm481_vm4, %v1708_v11, %v1705_v27 }
 0xcb3   :  { %v62_v19 = vpop.xlane.xlu0 %61 }
 0xcb4   :  { %v79_v20 = vmul.f32 %v1338_v8, %v62_v19 }
 0xcb6   :  { %v1740_v21 = vsub.f32 %v39_v60, %v79_v20 }
 0xcb8   :  { %v95_v33 = vmul.f32 %v1740_v21, %v1740_v21 }
 0xcba   :  { %v115_v34 = vsel %vm41_vm0, %v95_v33, 0.0 }
 0xcbb   :  { %116 = vadd.xlane.f32.xlu1 %v115_v34 }
 0xcc3   :  { %64 = vadd.xlane.f32.xlu1 %v63_v36 }
 0xd06   :  { %v889_v48 = vpop.f32.mrf.mxu3 }
 0xd07   :  { %v892_v50 = vadd.f32 %v889_v48, %v426_v47 }
 0xd09   :  { %1221 = vtanh.f32 %v892_v50  ;;  %v1150_v24 = vmul.f32 -1.442695, %v892_v50 }
 0xd0b   :  { %1223 = vpow2.f32 %v1150_v24 }
 0xd0f   :  { %v1222_v51 = vpop.eup %1221 }
 0xd10   :  { %915 = vrot.lane.b32.xlu2 %v1222_v51, %s1280_s20 }
 0xd11   :  { %v1224_v57 = vpop.eup %1223 }
 0xd12   :  { %v896_v22 = vadd.f32 1.0, %v1224_v57 }
 0xd14   :  { %1225 = vrcp.f32 %v896_v22  ;;  %v908_v4 = vand.u32 2147483648, %v896_v22  ;;  %vm902_vm7 = vweird.f32 %v896_v22  ;;  %v906_v62 = vand.u32 2147483647, %v896_v22 }
 0xd16   :  { %v909_v6 = vor.u32 1.1754944e-38, %v908_v4  ;;  %vm907_vm10 = vcmp.eq.f32.partialorder %v906_v62, 8.507059e+37 }
 0xd1a   :  { %v1226_v59 = vpop.eup %1225 }
 0xd1b   :  { %v898_v63 = vmul.f32 %v1226_v59, %v896_v22  ;;  %vm903_vm8 = vweird.f32 %v1226_v59 }
 0xd1c   :  { %vm904_vm9 = vmor %vm902_vm7, %vm903_vm8 }
 0xd1d   :  { %v899_v52 = vsub.f32 1.0, %v898_v63 }
 0xd1f   :  { %v900_v1 = vmul.f32 %v1226_v59, %v899_v52 }
 0xd21   :  { %v901_v3 = vadd.f32 %v1226_v59, %v900_v1 }
 0xd23   :  { %v905_v5 = vsel %vm904_vm9, %v1226_v59, %v901_v3 }
 0xd24   :  { %v910_v12 = vsel %vm907_vm10, %v909_v6, %v905_v5 }
 0xd2e   :  { %v117_v38 = vpop.xlane.xlu1 %116 }
 0xd2f   :  { %v127_v10 = vmul.f32 %v117_v38, %v1338_v8 }
 0xd31   :  { %v135_v13 = vadd.f32 1e-05, %v127_v10 }
 0xd33   :  { %1227 = vrsqrt.f32 %v135_v13  ;;  %vm203_vm1 = vweird.f32 %v135_v13 }
 0xd36   :  { %v65_v41 = vpop.xlane.xlu1 %64 }
 0xd37   :  { %v80_v53 = vmul.f32 %v1338_v8, %v65_v41 }
 0xd39   :  { %v1753_v54 = vsub.f32 %v40_v35, %v80_v53  ;;  %v1228_v23 = vpop.eup %1227  ;;  %v371_v53 = vld [vmem:[%s1879_s2 + $0x30] sm:$0xff] }
 0xd3a   :  { %v198_v58 = vmul.f32 %v1228_v23, %v135_v13  ;;  %vm204_vm11 = vweird.f32 %v1228_v23 }
 0xd3b   :  { %v96_v55 = vmul.f32 %v1753_v54, %v1753_v54  ;;  %vm205_vm12 = vmor %vm203_vm1, %vm204_vm11 }
 0xd3c   :  { %v199_v49 = vmul.f32 %v1228_v23, %v198_v58 }
 0xd3d   :  { %v118_v56 = vsel %vm41_vm0, %v96_v55, 0.0  ;;  %v490_v55 = vld [vmem:[%s1880_s3 + $0x28] sm:$0xff] }
 0xd3e   :  { %119 = vadd.xlane.f32.xlu1 %v118_v56  ;;  %v200_v31 = vmul.f32 0.5, %v199_v49 }
 0xd40   :  { %v201_v60 = vsub.f32 1.5, %v200_v31 }
 0xd42   :  { %v202_v25 = vmul.f32 %v1228_v23, %v201_v60 }
 0xd44   :  { %v206_v28 = vsel %vm205_vm12, %v1228_v23, %v202_v25  ;;  %vm1101_vm12 = vcmask 785408  }
 0xd45   :  { %v223_v15 = vmul.f32 %v206_v28, %v1740_v21  ;;  %v1813_v28 = vpop.permute.xlu0 %464 }
 0xd46   :  { %vm482_vm11 = vcmp.gt.f32.partialorder %v1813_v28, 0.0 }
 0xd47   :  { %v235_v16 = vmul.f32 %v1249_v30, %v223_v15 }
 0xd49   :  { %v247_v19 = vadd.f32 %v1250_v32, %v235_v16 }
 0xd4b   :  { %1130 = vmatmul.msk.f32.gmra.mxu0 %vm41_vm0, %v247_v19  ;;  %1138 = vmatmul.msk.f32.gmra.mxu1 %vm41_vm0, %v247_v19 }
 0xd57   :  { %410 = vperm.xlu1 %1162, %v372_v61  }
 0xd5f   :  { %1080 = vrot.lane.b32.xlu1 %v1543_v42, %s1280_s20 }
 0xd67   :  { %1084 = vrot.lane.b32.xlu1 %v714_v2, %s1282_s24 }
 0xd6a   :  { %v916_v7 = vpop.permute.xlu2 %915 }
 0xd6b   :  { %v918_v42 = vmul.f32 %v916_v7, %v910_v12 }
 0xd6d   :  { %920 = vrot.lane.b32.xlu2 %v918_v42, %s1281_s7 }
 0xdb1   :  { %v120_v20 = vpop.xlane.xlu1 %119 }
 0xdb2   :  { %v128_v33 = vmul.f32 %v120_v20, %v1338_v8  ;;  %v913_v8 = vmul.f32 %v910_v12, %v1784_v40 }
 0xdb4   :  { %v136_v34 = vadd.f32 1e-05, %v128_v33 }
 0xdb6   :  { %1229 = vrsqrt.f32 %v136_v34  ;;  %vm213_vm14 = vweird.f32 %v136_v34 }
 0xdbc   :  { %v1230_v21 = vpop.eup %1229 }
 0xdbd   :  { %v208_v35 = vmul.f32 %v1230_v21, %v136_v34  ;;  %vm214_vm2 = vweird.f32 %v1230_v21  ;;  %v435_v34 = vld [vmem:[%s1878_s1 + $0x30] sm:$0xff] }
 0xdbe   :  { %vm215_vm5 = vmor %vm213_vm14, %vm214_vm2 }
 0xdbf   :  { %v209_v36 = vmul.f32 %v1230_v21, %v208_v35 }
 0xdc1   :  { %v210_v37 = vmul.f32 0.5, %v209_v36 }
 0xdc3   :  { %v211_v39 = vsub.f32 1.5, %v210_v37 }
 0xdc5   :  { %v212_v43 = vmul.f32 %v1230_v21, %v211_v39 }
 0xdc7   :  { %v216_v44 = vsel %vm215_vm5, %v1230_v21, %v212_v43  ;;  %v921_v47 = vpop.permute.xlu2 %920  ;;  %v569_v21 = vsel %vm477_vm6, %v1481_v29, 0.0  ;;  %v491_v29 = vld [vmem:[%s1880_s3 + $0x30] sm:$0xff] }
 0xdc8   :  { %v923_v48 = vadd.f32 %v921_v47, %v913_v8  ;;  %v224_v50 = vmul.f32 %v216_v44, %v1753_v54  ;;  %v318_v59 = vpop.f32.mrf.mxu0  ;;  %v359_v61 = vpop.f32.mrf.mxu1  ;;  %v786_v44 = vsel %vm480_vm3, %v1671_v14, 0.0  ;;  %vm498_vm6 = vcmp.gt.f32.partialorder %v491_v29, 0.0 }
 0xdc9   :  { %v319_v63 = vadd.f32 %v318_v59, %v1460_v45  ;;  %v360_v52 = vadd.f32 %v359_v61, %v1462_v46  ;;  %v411_v35 = vpop.permute.xlu1 %410 }
 0xdca   :  { %1231 = vtanh.f32 %v923_v48  ;;  %v236_v51 = vmul.f32 %v1249_v30, %v224_v50  ;;  %v1819_v15 = vsel %vm482_vm11, %v923_v48, %v1784_v40  ;;  %vm420_vm3 = vcmp.gt.f32.partialorder %v411_v35, 0.5 }
 0xdcc   :  { %v248_v38 = vadd.f32 %v1250_v32, %v236_v51 }
 0xdce   :  { %1131 = vmatmul.msk.f32.gmra.mxu0 %vm41_vm0, %v248_v38  ;;  %1139 = vmatmul.msk.f32.gmra.mxu1 %vm41_vm0, %v248_v38  ;;  %vm497_vm0 = vcmp.gt.f32.partialorder %v490_v55, 0.0 }
 0xdd0   :  { %v1232_v41 = vpop.eup %1231 }
 0xdd1   :  { %926 = vrot.lane.b32.xlu2 %v1232_v41, %s1280_s20  ;;  %v1081_v37 = vpop.permute.xlu1 %1080 }
 0xdd9   :  { %v1085_v43 = vpop.permute.xlu1 %1084 }
 0xe2b   :  { %v927_v27 = vpop.permute.xlu2 %926 }
 0xe2c   :  { %v1791_v11 = vmul.f32 %v927_v27, %v910_v12 }
 0xe2e   :  { %933 = vrot.lane.b32.xlu2 %v1791_v11, %s1281_s7 }
 0xe36   :  { %936 = vrot.lane.b32.xlu2 %v1791_v11, %s1280_s20 }
 0xe3e   :  { %405 = vperm.xlu2 %1163, %v371_v53  }
 0xe4b   :  { %v321_v38 = vpop.f32.mrf.mxu0  ;;  %v362_v9 = vpop.f32.mrf.mxu1 }
 0xe4c   :  { %v322_v14 = vadd.f32 %v321_v38, %v1460_v45  ;;  %v363_v41 = vadd.f32 %v362_v9, %v1462_v46 }
 0xe4e   :  { %v428_v27 = vsel %vm420_vm3, %v322_v14, %v363_v41 }
 0xe88   :  { %v934_v54 = vpop.permute.xlu2 %933 }
 0xe90   :  { %v937_v24 = vpop.permute.xlu2 %936 }
 0xe91   :  { %v939_v56 = vsel %vm578_vm13, %v934_v54, %v937_v24 }
 0xe92   :  { %v1805_v57 = vsel %vm497_vm0, %v939_v56, %v1733_v17 }
 0xe93   :  { %1151 = vmatmul.msk.f32.vlgmr.msrb.gmra.mxu2 %vm507_vm15, %v1805_v57 }
 0xe98   :  { %v406_v22 = vpop.permute.xlu2 %405 }
 0xe99   :  { %vm419_vm8 = vcmp.gt.f32.partialorder %v406_v22, 0.5 }
 0xe9a   :  { %v427_v1 = vsel %vm419_vm8, %v319_v63, %v360_v52 }
 0xf16   :  { %v961_v3 = vpop.f32.mrf.mxu2 }
 0xf17   :  { %v964_v4 = vadd.f32 %v961_v3, %v427_v1 }
 0xf19   :  { %1233 = vtanh.f32 %v964_v4  ;;  %v1152_v17 = vmul.f32 -1.442695, %v964_v4 }
 0xf1b   :  { %1235 = vpow2.f32 %v1152_v17 }
 0xf1f   :  { %v1234_v62 = vpop.eup %1233 }
 0xf20   :  { %987 = vrot.lane.b32.xlu2 %v1234_v62, %s1280_s20 }
 0xf21   :  { %v1236_v2 = vpop.eup %1235 }
 0xf22   :  { %v968_v5 = vadd.f32 1.0, %v1236_v2  ;;  %v436_v2 = vld [vmem:[%s1878_s1 + $0x38] sm:$0xff]  ;;  %s1283_s1 = smov [#allocation2]  }
 0xf24   :  { %1237 = vrcp.f32 %v968_v5  ;;  %v980_v13 = vand.u32 2147483648, %v968_v5  ;;  %vm974_vm9 = vweird.f32 %v968_v5  ;;  %v978_v23 = vand.u32 2147483647, %v968_v5 }
 0xf26   :  { %v981_v49 = vor.u32 1.1754944e-38, %v980_v13  ;;  %vm979_vm1 = vcmp.eq.f32.partialorder %v978_v23, 8.507059e+37 }
 0xf2a   :  { %v1238_v6 = vpop.eup %1237 }
 0xf2b   :  { %v970_v7 = vmul.f32 %v1238_v6, %v968_v5  ;;  %vm975_vm7 = vweird.f32 %v1238_v6  ;;  %v858_v5 = vsel %vm481_vm4, %v1712_v0, 0.0  ;;  %v930_v0 = vsel %vm482_vm11, %v1791_v11, 0.0 }
 0xf2c   :  { %vm976_vm10 = vmor %vm974_vm9, %vm975_vm7 }
 0xf2d   :  { %v971_v12 = vsub.f32 1.0, %v970_v7 }
 0xf2f   :  { %v972_v42 = vmul.f32 %v1238_v6, %v971_v12 }
 0xf31   :  { %v973_v10 = vadd.f32 %v1238_v6, %v972_v42 }
 0xf33   :  { %v977_v58 = vsel %vm976_vm10, %v1238_v6, %v973_v10 }
 0xf34   :  { %v982_v60 = vsel %vm979_vm1, %v981_v49, %v977_v58 }
 0xf35   :  { %v985_v30 = vmul.f32 %v982_v60, %v1819_v15 }
 0xf7a   :  { %v988_v31 = vpop.permute.xlu2 %987 }
 0xf7b   :  { %v990_v25 = vmul.f32 %v988_v31, %v982_v60 }
 0xf7d   :  { %992 = vrot.lane.b32.xlu2 %v990_v25, %s1281_s7 }
 0xfd7   :  { %v993_v16 = vpop.permute.xlu2 %992 }
 0xfd8   :  { %v1822_v32 = vadd.f32 %v993_v16, %v985_v30 }
 0xfda   :  { %1239 = vtanh.f32 %v1822_v32 }
 0xfe0   :  { %v1240_v19 = vpop.eup %1239 }
 0xfe1   :  { %998 = vrot.lane.b32.xlu2 %v1240_v19, %s1280_s20 }
0x103b   :  { %v999_v20 = vpop.permute.xlu2 %998 }
0x103c   :  { %v1826_v33 = vmul.f32 %v999_v20, %v982_v60 }
0x103e   :  { %1008 = vrot.lane.b32.xlu2 %v1826_v33, %s1280_s20  ;;  %1005 = vrot.lane.b32.xlu0 %v1826_v33, %s1281_s7 }
0x1046   :  { %469 = vperm.xlu2 %1163, %v435_v34  }
0x104e   :  { %1076 = vrot.lane.b32.xlu2 %v569_v21, %s1281_s7 }
0x1098   :  { %v1009_v36 = vpop.permute.xlu2 %1008 }
0x10a0   :  { %v470_v39 = vpop.permute.xlu2 %469 }
0x10a1   :  { %vm483_vm8 = vcmp.gt.f32.partialorder %v470_v39, 0.0 }
0x10a2   :  { %v1002_v6 = vsel %vm483_vm8, %v1826_v33, 0.0  ;;  %v1003_v7 = vsel %vm483_vm8, %v1822_v32, %v1819_v15 }
0x10a8   :  { %v1077_v40 = vpop.permute.xlu2 %1076 }
0x10a9   :  { %v1099_v8 = vsel %vm578_vm13, %v1077_v40, %v1081_v37 }
0x10aa   :  { %v1100_v47 = vsel %vm507_vm15, %v1099_v8, %v1085_v43 }
0x10ab   :  { %v1102_v26 = vsel %vm1101_vm12, %v1100_v47, %v786_v44 }
0x10ac   :  { %1106 = vst [vmem:[#allocation2] sm:$0xff] %v1102_v26 }
0x10b0   :  { %v1006_v48 = vpop.permute.xlu0 %1005 }
0x10b1   :  { %v1011_v50 = vsel %vm578_vm13, %v1006_v48, %v1009_v36 }
0x10b2   :  { %v1012_v51 = vsel %vm498_vm6, %v1011_v50, %v1805_v57 }
0x10b3   :  { %1153 = vmatmul.msk.f32.vlgmr.msrb.gmra.mxu3 %vm507_vm15, %v1012_v51 }
0x1136   :  { %v1033_v53 = vpop.f32.mrf.mxu3 }
0x1137   :  { %v1036_v54 = vadd.f32 %v1033_v53, %v428_v27 }
0x1139   :  { %1241 = vtanh.f32 %v1036_v54  ;;  %v1154_v24 = vmul.f32 -1.442695, %v1036_v54 }
0x113b   :  { %1243 = vpow2.f32 %v1154_v24 }
0x113f   :  { %v1242_v55 = vpop.eup %1241 }
0x1140   :  { %1059 = vrot.lane.b32.xlu0 %v1242_v55, %s1280_s20 }
0x1141   :  { %v1244_v56 = vpop.eup %1243 }
0x1142   :  { %v1040_v57 = vadd.f32 1.0, %v1244_v56 }
0x1144   :  { %1245 = vrcp.f32 %v1040_v57  ;;  %v1052_v46 = vand.u32 2147483648, %v1040_v57  ;;  %vm1046_vm2 = vweird.f32 %v1040_v57  ;;  %v1050_v52 = vand.u32 2147483647, %v1040_v57 }
0x1146   :  { %v1053_v3 = vor.u32 1.1754944e-38, %v1052_v46  ;;  %vm1051_vm0 = vcmp.eq.f32.partialorder %v1050_v52, 8.507059e+37 }
0x114a   :  { %v1246_v22 = vpop.eup %1245 }
0x114b   :  { %v1042_v59 = vmul.f32 %v1246_v22, %v1040_v57  ;;  %vm1047_vm14 = vweird.f32 %v1246_v22 }
0x114c   :  { %vm1048_vm5 = vmor %vm1046_vm2, %vm1047_vm14 }
0x114d   :  { %v1043_v61 = vsub.f32 1.0, %v1042_v59 }
0x114f   :  { %v1044_v63 = vmul.f32 %v1246_v22, %v1043_v61 }
0x1151   :  { %v1045_v45 = vadd.f32 %v1246_v22, %v1044_v63 }
0x1153   :  { %v1049_v1 = vsel %vm1048_vm5, %v1246_v22, %v1045_v45 }
0x1154   :  { %v1054_v62 = vsel %vm1051_vm0, %v1053_v3, %v1049_v1 }
0x1155   :  { %v1057_v12 = vmul.f32 %v1054_v62, %v1003_v7 }
0x11b2   :  { %v1060_v4 = vpop.permute.xlu0 %1059 }
0x11b3   :  { %v1062_v17 = vmul.f32 %v1060_v4, %v1054_v62 }
0x11b5   :  { %1064 = vrot.lane.b32.xlu0 %v1062_v17, %s1281_s7 }
0x11bd   :  { %474 = vperm.xlu0 %1164, %v436_v2  }
0x11c5   :  { %1088 = vrot.lane.b32.xlu0 %v858_v5, %s1281_s7  ;;  %s1113_s7 = sshll.u32 %s1283_s1, 4  ;;  %s1114_s7 = int_to_ptr.vmem [resolvable:$true] %s1113_s7 }
0x11cd   :  { %1096 = vrot.lane.b32.xlu0 %v1002_v6, %s1282_s24 }
0x1227   :  { %v1065_v42 = vpop.permute.xlu0 %1064 }
0x1228   :  { %v1067_v10 = vadd.f32 %v1065_v42, %v1057_v12 }
0x122a   :  { %1247 = vtanh.f32 %v1067_v10 }
0x122f   :  { %v475_v18 = vpop.permute.xlu0 %474 }
0x1230   :  { %v1248_v13 = vpop.eup %1247  ;;  %vm484_vm4 = vcmp.gt.f32.partialorder %v475_v18, 0.0 }
0x1231   :  { %1070 = vrot.lane.b32.xlu2 %v1248_v13, %s1280_s20 }
0x1237   :  { %v1089_v23 = vpop.permute.xlu0 %1088 }
0x1239   :  { %1092 = vrot.lane.b32.xlu2 %v930_v0, %s1280_s20 }
0x123f   :  { %v1097_v60 = vpop.permute.xlu0 %1096 }
0x128b   :  { %v1071_v58 = vpop.permute.xlu2 %1070 }
0x128c   :  { %v1073_v49 = vmul.f32 %v1071_v58, %v1054_v62 }
0x128e   :  { %v1074_v15 = vsel %vm484_vm4, %v1073_v49, 0.0 }
0x1293   :  { %v1093_v31 = vpop.permute.xlu2 %1092 }
0x1294   :  { %v1103_v25 = vsel %vm578_vm13, %v1089_v23, %v1093_v31 }
0x1295   :  { %v1104_v11 = vsel %vm507_vm15, %v1103_v25, %v1097_v60 }
0x1296   :  { %v1105_v28 = vsel %vm1101_vm12, %v1104_v11, %v1074_v15 }
0x1297   :  { %1107 = vst [vmem:[#allocation2 + $0x8] sm:$0xff] %v1105_v28 }
0x1298   :  { %1118 = dma.vmem_to_hbm [thread:$0]  %s1114_s7, 256, %s1116_s6, [#allocation3]  }
0x1299   :  { %1275 = dma.done.wait [#allocation3], 256  }
0x129a   :  { %1276 = vsyncadd [#allocation3], 4294967040 }
0x129b   :  { %1123 = vsyncpa [#allocation3], 1 }

</bundles_post_ra>
